<compile_context>
chip_gen: v6e
topology: v6e:2x2x1
jax: 0.10.0
libtpu: 0.0.40
codegen_flags: <defaults>
</compile_context>

<pallas_src>
import functools

import jax
import jax.numpy as jnp
from jax.experimental import pallas as pl
from jax.experimental.pallas import tpu as pltpu  # noqa: F401  (not needed at this size)

I_DIM = 6      # LSTM input size
H_DIM = 64     # LSTM hidden size
HP = 128       # hidden padded so each gate occupies one full 128-lane vreg
L1_DIM = 128   # lin1 out
L2_DIM = 6     # lin2 out


def lstm_net_kernel(x_ref, wih_t_ref, whh_t_ref, b_ref,
                    w1_t_ref, b1_ref, w2_t_ref, b2_ref,
                    out_ref, *, batch, seq_len):
    # ---- hoisted out of the recurrence -------------------------------------
    # Input projection for ALL timesteps in one MXU pass: (T*B, I) @ (I, 4*HP)
    xw = jnp.dot(x_ref[...], wih_t_ref[...], preferred_element_type=jnp.float32)
    xw = xw + b_ref[...]                 # fold bias once (no per-step broadcast)
    whh_t = whh_t_ref[...]               # (HP, 4*HP), loaded once

    h = jnp.zeros((batch, HP), jnp.float32)
    c = jnp.zeros((batch, HP), jnp.float32)

    # ---- serial recurrence, fully unrolled (seq_len is static) -------------
    for t in range(seq_len):
        gates = (jnp.dot(h, whh_t, preferred_element_type=jnp.float32)
                 + xw[t * batch:(t + 1) * batch, :])          # (B, 4*HP)
        # gate slices are 128-lane aligned (free, no cross-lane extracts)
        i_g = jax.nn.sigmoid(gates[:, 0 * HP:1 * HP])
        f_g = jax.nn.sigmoid(gates[:, 1 * HP:2 * HP])
        g_g = jnp.tanh(gates[:, 2 * HP:3 * HP])
        o_g = jax.nn.sigmoid(gates[:, 3 * HP:4 * HP])
        c = f_g * c + i_g * g_g
        h = o_g * jnp.tanh(c)
        # padded lanes [H_DIM:HP] stay exactly 0 (zero weights/bias there).

    # ---- head: two Linear layers on h_T (== r_out[:, -1, :]) ---------------
    y1 = jnp.dot(h, w1_t_ref[...], preferred_element_type=jnp.float32) + b1_ref[...]
    y2 = jnp.dot(y1, w2_t_ref[...], preferred_element_type=jnp.float32) + b2_ref[...]
    out_ref[...] = y2.astype(out_ref.dtype)


def lstm_network_forward(x, params):
    """x: (B, T, I) float32 (batch_first, like PyTorch). Returns (B, 6) float32."""
    B, T, I = x.shape
    assert I == I_DIM
    H = H_DIM

    # (B,T,I) -> (T,B,I) -> (T*B, I): rows grouped by timestep so the kernel
    # can slice timestep t as rows [t*B, (t+1)*B).
    x2d = jnp.transpose(x, (1, 0, 2)).reshape(T * B, I)

    # Pad hidden 64 -> 128 per gate; padded rows/cols/bias lanes are zero so
    # padded h/c lanes never leak into real lanes through the recurrence.
    b_sum = params["b_ih"] + params["b_hh"]
    wih_t = jnp.zeros((I_DIM, 4 * HP), jnp.float32)   # (I, 4*HP)
    whh_t = jnp.zeros((HP, 4 * HP), jnp.float32)      # (HP, 4*HP)
    bias = jnp.zeros((1, 4 * HP), jnp.float32)
    for k in range(4):  # gate order: i, f, g, o (PyTorch)
        wih_t = wih_t.at[:, k * HP:k * HP + H].set(params["w_ih"][k * H:(k + 1) * H, :].T)
        whh_t = whh_t.at[:H, k * HP:k * HP + H].set(params["w_hh"][k * H:(k + 1) * H, :].T)
        bias = bias.at[0, k * HP:k * HP + H].set(b_sum[k * H:(k + 1) * H])

    w1_t = jnp.zeros((HP, L1_DIM), jnp.float32).at[:H, :].set(params["w1"].T)  # (HP, 128)
    b1 = params["b1"].reshape(1, L1_DIM)
    w2_t = params["w2"].T                              # (128, 6)
    b2 = params["b2"].reshape(1, L2_DIM)

    full = lambda a: pl.BlockSpec(a.shape, lambda: (0,) * a.ndim)
    kernel = functools.partial(lstm_net_kernel, batch=B, seq_len=T)

    return pl.pallas_call(
        kernel,
        out_shape=jax.ShapeDtypeStruct((B, L2_DIM), jnp.float32),
        in_specs=[full(x2d), full(wih_t), full(whh_t), full(bias),
                  full(w1_t), full(b1), full(w2_t), full(b2)],
        out_specs=pl.BlockSpec((B, L2_DIM), lambda: (0, 0)),
    )(x2d, wih_t, whh_t, bias, w1_t, b1, w2_t, b2)


def reference_forward(x, params):
    """Pure-JAX reference matching PyTorch nn.LSTM + Linear semantics."""
    B, T, I = x.shape
    h = jnp.zeros((B, H_DIM), jnp.float32)
    c = jnp.zeros((B, H_DIM), jnp.float32)
    bias = params["b_ih"] + params["b_hh"]

    def step(carry, x_t):
        h, c = carry
        gates = x_t @ params["w_ih"].T + h @ params["w_hh"].T + bias
        i_g = jax.nn.sigmoid(gates[:, 0 * H_DIM:1 * H_DIM])
        f_g = jax.nn.sigmoid(gates[:, 1 * H_DIM:2 * H_DIM])
        g_g = jnp.tanh(gates[:, 2 * H_DIM:3 * H_DIM])
        o_g = jax.nn.sigmoid(gates[:, 3 * H_DIM:4 * H_DIM])
        c = f_g * c + i_g * g_g
        h = o_g * jnp.tanh(c)
        return (h, c), None

    (h, _), _ = jax.lax.scan(step, (h, c), jnp.transpose(x, (1, 0, 2)))
    y = h @ params["w1"].T + params["b1"]
    y = y @ params["w2"].T + params["b2"]
    return y


def init_params(key):
    """Deterministic init mimicking PyTorch default U(-1/sqrt(fan), 1/sqrt(fan))."""
    ks = jax.random.split(key, 8)
    u = lambda k, shape, bound: jax.random.uniform(
        k, shape, jnp.float32, minval=-bound, maxval=bound)
    s_lstm = 1.0 / jnp.sqrt(H_DIM)
    s_l1 = 1.0 / jnp.sqrt(H_DIM)
    s_l2 = 1.0 / jnp.sqrt(L1_DIM)
    return {
        "w_ih": u(ks[0], (4 * H_DIM, I_DIM), s_lstm),   # gate order: i, f, g, o
        "w_hh": u(ks[1], (4 * H_DIM, H_DIM), s_lstm),
        "b_ih": u(ks[2], (4 * H_DIM,), s_lstm),
        "b_hh": u(ks[3], (4 * H_DIM,), s_lstm),
        "w1": u(ks[4], (L1_DIM, H_DIM), s_l1),
        "b1": u(ks[5], (L1_DIM,), s_l1),
        "w2": u(ks[6], (L2_DIM, L1_DIM), s_l2),
        "b2": u(ks[7], (L2_DIM,), s_l2),
    }


if __name__ == "__main__":
    key = jax.random.PRNGKey(0)
    k_x, k_p = jax.random.split(key)

    B, T = 2, 8
    x = jax.random.normal(k_x, (B, T, I_DIM), jnp.float32)
    params = init_params(k_p)

    out = jax.block_until_ready(lstm_network_forward(x, params))
    ref = jax.block_until_ready(reference_forward(x, params))

    assert out.shape == (B, L2_DIM)
    assert jnp.allclose(out, ref, atol=1e-5, rtol=1e-5), "mismatch vs reference"

    print("KERNEL_OK")
</pallas_src>

<mosaic_0001>
module attributes {stable_mosaic.version = 11 : i64} {
  func.func @lstm_net_kernel(%arg0: memref<16x6xf32, #tpu.memory_space<vmem>>, %arg1: memref<6x512xf32, #tpu.memory_space<vmem>>, %arg2: memref<128x512xf32, #tpu.memory_space<vmem>>, %arg3: memref<1x512xf32, #tpu.memory_space<vmem>>, %arg4: memref<128x128xf32, #tpu.memory_space<vmem>>, %arg5: memref<1x128xf32, #tpu.memory_space<vmem>>, %arg6: memref<128x6xf32, #tpu.memory_space<vmem>>, %arg7: memref<1x6xf32, #tpu.memory_space<vmem>>, %arg8: memref<2x6xf32, #tpu.memory_space<vmem>>) attributes {dimension_semantics = [], scalar_prefetch = 0 : i64, scratch_operands = 0 : i64, tpu.core_type = #tpu.core_type<tc>} {
    %c0 = arith.constant 0 : index
    %c0_0 = arith.constant 0 : index
    %0 = vector.load %arg0[%c0, %c0_0] : memref<16x6xf32, #tpu.memory_space<vmem>>, vector<16x6xf32>
    %c0_1 = arith.constant 0 : index
    %c0_2 = arith.constant 0 : index
    %1 = vector.load %arg1[%c0_1, %c0_2] : memref<6x512xf32, #tpu.memory_space<vmem>>, vector<6x512xf32>
    %cst = arith.constant dense<0.000000e+00> : vector<16x512xf32>
    %2 = tpu.matmul %0, %1, %cst {dimension_numbers = #tpu.dot_dimension_numbers<[1], [0], [0], [1], [0, 0, 1, 1], [], []>} : vector<16x6xf32>, vector<6x512xf32>, vector<16x512xf32> -> vector<16x512xf32>
    %c0_3 = arith.constant 0 : index
    %c0_4 = arith.constant 0 : index
    %3 = vector.load %arg3[%c0_3, %c0_4] : memref<1x512xf32, #tpu.memory_space<vmem>>, vector<1x512xf32>
    %4 = vector.broadcast %3 : vector<1x512xf32> to vector<16x512xf32>
    %5 = arith.addf %2, %4 : vector<16x512xf32>
    %c0_5 = arith.constant 0 : index
    %c0_6 = arith.constant 0 : index
    %6 = vector.load %arg2[%c0_5, %c0_6] : memref<128x512xf32, #tpu.memory_space<vmem>>, vector<128x512xf32>
    %cst_7 = arith.constant 0.000000e+00 : f32
    %7 = vector.broadcast %cst_7 : f32 to vector<2x128xf32>
    %cst_8 = arith.constant 0.000000e+00 : f32
    %8 = vector.broadcast %cst_8 : f32 to vector<2x128xf32>
    %cst_9 = arith.constant dense<0.000000e+00> : vector<2x512xf32>
    %9 = tpu.matmul %7, %6, %cst_9 {dimension_numbers = #tpu.dot_dimension_numbers<[1], [0], [0], [1], [0, 0, 1, 1], [], []>} : vector<2x128xf32>, vector<128x512xf32>, vector<2x512xf32> -> vector<2x512xf32>
    %10 = vector.extract_strided_slice %5 {offsets = [0, 0], sizes = [2, 512], strides = [1, 1]} : vector<16x512xf32> to vector<2x512xf32>
    %11 = arith.addf %9, %10 : vector<2x512xf32>
    %12 = vector.extract_strided_slice %11 {offsets = [0, 0], sizes = [2, 128], strides = [1, 1]} : vector<2x512xf32> to vector<2x128xf32>
    %13 = arith.negf %12 : vector<2x128xf32>
    %14 = math.exp %13 : vector<2x128xf32>
    %cst_10 = arith.constant 1.000000e+00 : f32
    %15 = vector.broadcast %cst_10 : f32 to vector<2x128xf32>
    %16 = arith.addf %15, %14 : vector<2x128xf32>
    %17 = arith.divf %15, %16 : vector<2x128xf32>
    %18 = vector.extract_strided_slice %11 {offsets = [0, 128], sizes = [2, 128], strides = [1, 1]} : vector<2x512xf32> to vector<2x128xf32>
    %19 = arith.negf %18 : vector<2x128xf32>
    %20 = math.exp %19 : vector<2x128xf32>
    %cst_11 = arith.constant 1.000000e+00 : f32
    %21 = vector.broadcast %cst_11 : f32 to vector<2x128xf32>
    %22 = arith.addf %21, %20 : vector<2x128xf32>
    %23 = arith.divf %21, %22 : vector<2x128xf32>
    %24 = vector.extract_strided_slice %11 {offsets = [0, 256], sizes = [2, 128], strides = [1, 1]} : vector<2x512xf32> to vector<2x128xf32>
    %25 = math.tanh %24 : vector<2x128xf32>
    %26 = vector.extract_strided_slice %11 {offsets = [0, 384], sizes = [2, 128], strides = [1, 1]} : vector<2x512xf32> to vector<2x128xf32>
    %27 = arith.negf %26 : vector<2x128xf32>
    %28 = math.exp %27 : vector<2x128xf32>
    %cst_12 = arith.constant 1.000000e+00 : f32
    %29 = vector.broadcast %cst_12 : f32 to vector<2x128xf32>
    %30 = arith.addf %29, %28 : vector<2x128xf32>
    %31 = arith.divf %29, %30 : vector<2x128xf32>
    %32 = arith.mulf %23, %8 : vector<2x128xf32>
    %33 = arith.mulf %17, %25 : vector<2x128xf32>
    %34 = arith.addf %32, %33 : vector<2x128xf32>
    %35 = math.tanh %34 : vector<2x128xf32>
    %36 = arith.mulf %31, %35 : vector<2x128xf32>
    %cst_13 = arith.constant dense<0.000000e+00> : vector<2x512xf32>
    %37 = tpu.matmul %36, %6, %cst_13 {dimension_numbers = #tpu.dot_dimension_numbers<[1], [0], [0], [1], [0, 0, 1, 1], [], []>} : vector<2x128xf32>, vector<128x512xf32>, vector<2x512xf32> -> vector<2x512xf32>
    %38 = vector.extract_strided_slice %5 {offsets = [2, 0], sizes = [2, 512], strides = [1, 1]} : vector<16x512xf32> to vector<2x512xf32>
    %39 = arith.addf %37, %38 : vector<2x512xf32>
    %40 = vector.extract_strided_slice %39 {offsets = [0, 0], sizes = [2, 128], strides = [1, 1]} : vector<2x512xf32> to vector<2x128xf32>
    %41 = arith.negf %40 : vector<2x128xf32>
    %42 = math.exp %41 : vector<2x128xf32>
    %cst_14 = arith.constant 1.000000e+00 : f32
    %43 = vector.broadcast %cst_14 : f32 to vector<2x128xf32>
    %44 = arith.addf %43, %42 : vector<2x128xf32>
    %45 = arith.divf %43, %44 : vector<2x128xf32>
    %46 = vector.extract_strided_slice %39 {offsets = [0, 128], sizes = [2, 128], strides = [1, 1]} : vector<2x512xf32> to vector<2x128xf32>
    %47 = arith.negf %46 : vector<2x128xf32>
    %48 = math.exp %47 : vector<2x128xf32>
    %cst_15 = arith.constant 1.000000e+00 : f32
    %49 = vector.broadcast %cst_15 : f32 to vector<2x128xf32>
    %50 = arith.addf %49, %48 : vector<2x128xf32>
    %51 = arith.divf %49, %50 : vector<2x128xf32>
    %52 = vector.extract_strided_slice %39 {offsets = [0, 256], sizes = [2, 128], strides = [1, 1]} : vector<2x512xf32> to vector<2x128xf32>
    %53 = math.tanh %52 : vector<2x128xf32>
    %54 = vector.extract_strided_slice %39 {offsets = [0, 384], sizes = [2, 128], strides = [1, 1]} : vector<2x512xf32> to vector<2x128xf32>
    %55 = arith.negf %54 : vector<2x128xf32>
    %56 = math.exp %55 : vector<2x128xf32>
    %cst_16 = arith.constant 1.000000e+00 : f32
    %57 = vector.broadcast %cst_16 : f32 to vector<2x128xf32>
    %58 = arith.addf %57, %56 : vector<2x128xf32>
    %59 = arith.divf %57, %58 : vector<2x128xf32>
    %60 = arith.mulf %51, %34 : vector<2x128xf32>
    %61 = arith.mulf %45, %53 : vector<2x128xf32>
    %62 = arith.addf %60, %61 : vector<2x128xf32>
    %63 = math.tanh %62 : vector<2x128xf32>
    %64 = arith.mulf %59, %63 : vector<2x128xf32>
    %cst_17 = arith.constant dense<0.000000e+00> : vector<2x512xf32>
    %65 = tpu.matmul %64, %6, %cst_17 {dimension_numbers = #tpu.dot_dimension_numbers<[1], [0], [0], [1], [0, 0, 1, 1], [], []>} : vector<2x128xf32>, vector<128x512xf32>, vector<2x512xf32> -> vector<2x512xf32>
    %66 = vector.extract_strided_slice %5 {offsets = [4, 0], sizes = [2, 512], strides = [1, 1]} : vector<16x512xf32> to vector<2x512xf32>
    %67 = arith.addf %65, %66 : vector<2x512xf32>
    %68 = vector.extract_strided_slice %67 {offsets = [0, 0], sizes = [2, 128], strides = [1, 1]} : vector<2x512xf32> to vector<2x128xf32>
    %69 = arith.negf %68 : vector<2x128xf32>
    %70 = math.exp %69 : vector<2x128xf32>
    %cst_18 = arith.constant 1.000000e+00 : f32
    %71 = vector.broadcast %cst_18 : f32 to vector<2x128xf32>
    %72 = arith.addf %71, %70 : vector<2x128xf32>
    %73 = arith.divf %71, %72 : vector<2x128xf32>
    %74 = vector.extract_strided_slice %67 {offsets = [0, 128], sizes = [2, 128], strides = [1, 1]} : vector<2x512xf32> to vector<2x128xf32>
    %75 = arith.negf %74 : vector<2x128xf32>
    %76 = math.exp %75 : vector<2x128xf32>
    %cst_19 = arith.constant 1.000000e+00 : f32
    %77 = vector.broadcast %cst_19 : f32 to vector<2x128xf32>
    %78 = arith.addf %77, %76 : vector<2x128xf32>
    %79 = arith.divf %77, %78 : vector<2x128xf32>
    %80 = vector.extract_strided_slice %67 {offsets = [0, 256], sizes = [2, 128], strides = [1, 1]} : vector<2x512xf32> to vector<2x128xf32>
    %81 = math.tanh %80 : vector<2x128xf32>
    %82 = vector.extract_strided_slice %67 {offsets = [0, 384], sizes = [2, 128], strides = [1, 1]} : vector<2x512xf32> to vector<2x128xf32>
    %83 = arith.negf %82 : vector<2x128xf32>
    %84 = math.exp %83 : vector<2x128xf32>
    %cst_20 = arith.constant 1.000000e+00 : f32
    %85 = vector.broadcast %cst_20 : f32 to vector<2x128xf32>
    %86 = arith.addf %85, %84 : vector<2x128xf32>
    %87 = arith.divf %85, %86 : vector<2x128xf32>
    %88 = arith.mulf %79, %62 : vector<2x128xf32>
    %89 = arith.mulf %73, %81 : vector<2x128xf32>
    %90 = arith.addf %88, %89 : vector<2x128xf32>
    %91 = math.tanh %90 : vector<2x128xf32>
    %92 = arith.mulf %87, %91 : vector<2x128xf32>
    %cst_21 = arith.constant dense<0.000000e+00> : vector<2x512xf32>
    %93 = tpu.matmul %92, %6, %cst_21 {dimension_numbers = #tpu.dot_dimension_numbers<[1], [0], [0], [1], [0, 0, 1, 1], [], []>} : vector<2x128xf32>, vector<128x512xf32>, vector<2x512xf32> -> vector<2x512xf32>
    %94 = vector.extract_strided_slice %5 {offsets = [6, 0], sizes = [2, 512], strides = [1, 1]} : vector<16x512xf32> to vector<2x512xf32>
    %95 = arith.addf %93, %94 : vector<2x512xf32>
    %96 = vector.extract_strided_slice %95 {offsets = [0, 0], sizes = [2, 128], strides = [1, 1]} : vector<2x512xf32> to vector<2x128xf32>
    %97 = arith.negf %96 : vector<2x128xf32>
    %98 = math.exp %97 : vector<2x128xf32>
    %cst_22 = arith.constant 1.000000e+00 : f32
    %99 = vector.broadcast %cst_22 : f32 to vector<2x128xf32>
    %100 = arith.addf %99, %98 : vector<2x128xf32>
    %101 = arith.divf %99, %100 : vector<2x128xf32>
    %102 = vector.extract_strided_slice %95 {offsets = [0, 128], sizes = [2, 128], strides = [1, 1]} : vector<2x512xf32> to vector<2x128xf32>
    %103 = arith.negf %102 : vector<2x128xf32>
    %104 = math.exp %103 : vector<2x128xf32>
    %cst_23 = arith.constant 1.000000e+00 : f32
    %105 = vector.broadcast %cst_23 : f32 to vector<2x128xf32>
    %106 = arith.addf %105, %104 : vector<2x128xf32>
    %107 = arith.divf %105, %106 : vector<2x128xf32>
    %108 = vector.extract_strided_slice %95 {offsets = [0, 256], sizes = [2, 128], strides = [1, 1]} : vector<2x512xf32> to vector<2x128xf32>
    %109 = math.tanh %108 : vector<2x128xf32>
    %110 = vector.extract_strided_slice %95 {offsets = [0, 384], sizes = [2, 128], strides = [1, 1]} : vector<2x512xf32> to vector<2x128xf32>
    %111 = arith.negf %110 : vector<2x128xf32>
    %112 = math.exp %111 : vector<2x128xf32>
    %cst_24 = arith.constant 1.000000e+00 : f32
    %113 = vector.broadcast %cst_24 : f32 to vector<2x128xf32>
    %114 = arith.addf %113, %112 : vector<2x128xf32>
    %115 = arith.divf %113, %114 : vector<2x128xf32>
    %116 = arith.mulf %107, %90 : vector<2x128xf32>
    %117 = arith.mulf %101, %109 : vector<2x128xf32>
    %118 = arith.addf %116, %117 : vector<2x128xf32>
    %119 = math.tanh %118 : vector<2x128xf32>
    %120 = arith.mulf %115, %119 : vector<2x128xf32>
    %cst_25 = arith.constant dense<0.000000e+00> : vector<2x512xf32>
    %121 = tpu.matmul %120, %6, %cst_25 {dimension_numbers = #tpu.dot_dimension_numbers<[1], [0], [0], [1], [0, 0, 1, 1], [], []>} : vector<2x128xf32>, vector<128x512xf32>, vector<2x512xf32> -> vector<2x512xf32>
    %122 = vector.extract_strided_slice %5 {offsets = [8, 0], sizes = [2, 512], strides = [1, 1]} : vector<16x512xf32> to vector<2x512xf32>
    %123 = arith.addf %121, %122 : vector<2x512xf32>
    %124 = vector.extract_strided_slice %123 {offsets = [0, 0], sizes = [2, 128], strides = [1, 1]} : vector<2x512xf32> to vector<2x128xf32>
    %125 = arith.negf %124 : vector<2x128xf32>
    %126 = math.exp %125 : vector<2x128xf32>
    %cst_26 = arith.constant 1.000000e+00 : f32
    %127 = vector.broadcast %cst_26 : f32 to vector<2x128xf32>
    %128 = arith.addf %127, %126 : vector<2x128xf32>
    %129 = arith.divf %127, %128 : vector<2x128xf32>
    %130 = vector.extract_strided_slice %123 {offsets = [0, 128], sizes = [2, 128], strides = [1, 1]} : vector<2x512xf32> to vector<2x128xf32>
    %131 = arith.negf %130 : vector<2x128xf32>
    %132 = math.exp %131 : vector<2x128xf32>
    %cst_27 = arith.constant 1.000000e+00 : f32
    %133 = vector.broadcast %cst_27 : f32 to vector<2x128xf32>
    %134 = arith.addf %133, %132 : vector<2x128xf32>
    %135 = arith.divf %133, %134 : vector<2x128xf32>
    %136 = vector.extract_strided_slice %123 {offsets = [0, 256], sizes = [2, 128], strides = [1, 1]} : vector<2x512xf32> to vector<2x128xf32>
    %137 = math.tanh %136 : vector<2x128xf32>
    %138 = vector.extract_strided_slice %123 {offsets = [0, 384], sizes = [2, 128], strides = [1, 1]} : vector<2x512xf32> to vector<2x128xf32>
    %139 = arith.negf %138 : vector<2x128xf32>
    %140 = math.exp %139 : vector<2x128xf32>
    %cst_28 = arith.constant 1.000000e+00 : f32
    %141 = vector.broadcast %cst_28 : f32 to vector<2x128xf32>
    %142 = arith.addf %141, %140 : vector<2x128xf32>
    %143 = arith.divf %141, %142 : vector<2x128xf32>
    %144 = arith.mulf %135, %118 : vector<2x128xf32>
    %145 = arith.mulf %129, %137 : vector<2x128xf32>
    %146 = arith.addf %144, %145 : vector<2x128xf32>
    %147 = math.tanh %146 : vector<2x128xf32>
    %148 = arith.mulf %143, %147 : vector<2x128xf32>
    %cst_29 = arith.constant dense<0.000000e+00> : vector<2x512xf32>
    %149 = tpu.matmul %148, %6, %cst_29 {dimension_numbers = #tpu.dot_dimension_numbers<[1], [0], [0], [1], [0, 0, 1, 1], [], []>} : vector<2x128xf32>, vector<128x512xf32>, vector<2x512xf32> -> vector<2x512xf32>
    %150 = vector.extract_strided_slice %5 {offsets = [10, 0], sizes = [2, 512], strides = [1, 1]} : vector<16x512xf32> to vector<2x512xf32>
    %151 = arith.addf %149, %150 : vector<2x512xf32>
    %152 = vector.extract_strided_slice %151 {offsets = [0, 0], sizes = [2, 128], strides = [1, 1]} : vector<2x512xf32> to vector<2x128xf32>
    %153 = arith.negf %152 : vector<2x128xf32>
    %154 = math.exp %153 : vector<2x128xf32>
    %cst_30 = arith.constant 1.000000e+00 : f32
    %155 = vector.broadcast %cst_30 : f32 to vector<2x128xf32>
    %156 = arith.addf %155, %154 : vector<2x128xf32>
    %157 = arith.divf %155, %156 : vector<2x128xf32>
    %158 = vector.extract_strided_slice %151 {offsets = [0, 128], sizes = [2, 128], strides = [1, 1]} : vector<2x512xf32> to vector<2x128xf32>
    %159 = arith.negf %158 : vector<2x128xf32>
    %160 = math.exp %159 : vector<2x128xf32>
    %cst_31 = arith.constant 1.000000e+00 : f32
    %161 = vector.broadcast %cst_31 : f32 to vector<2x128xf32>
    %162 = arith.addf %161, %160 : vector<2x128xf32>
    %163 = arith.divf %161, %162 : vector<2x128xf32>
    %164 = vector.extract_strided_slice %151 {offsets = [0, 256], sizes = [2, 128], strides = [1, 1]} : vector<2x512xf32> to vector<2x128xf32>
    %165 = math.tanh %164 : vector<2x128xf32>
    %166 = vector.extract_strided_slice %151 {offsets = [0, 384], sizes = [2, 128], strides = [1, 1]} : vector<2x512xf32> to vector<2x128xf32>
    %167 = arith.negf %166 : vector<2x128xf32>
    %168 = math.exp %167 : vector<2x128xf32>
    %cst_32 = arith.constant 1.000000e+00 : f32
    %169 = vector.broadcast %cst_32 : f32 to vector<2x128xf32>
    %170 = arith.addf %169, %168 : vector<2x128xf32>
    %171 = arith.divf %169, %170 : vector<2x128xf32>
    %172 = arith.mulf %163, %146 : vector<2x128xf32>
    %173 = arith.mulf %157, %165 : vector<2x128xf32>
    %174 = arith.addf %172, %173 : vector<2x128xf32>
    %175 = math.tanh %174 : vector<2x128xf32>
    %176 = arith.mulf %171, %175 : vector<2x128xf32>
    %cst_33 = arith.constant dense<0.000000e+00> : vector<2x512xf32>
    %177 = tpu.matmul %176, %6, %cst_33 {dimension_numbers = #tpu.dot_dimension_numbers<[1], [0], [0], [1], [0, 0, 1, 1], [], []>} : vector<2x128xf32>, vector<128x512xf32>, vector<2x512xf32> -> vector<2x512xf32>
    %178 = vector.extract_strided_slice %5 {offsets = [12, 0], sizes = [2, 512], strides = [1, 1]} : vector<16x512xf32> to vector<2x512xf32>
    %179 = arith.addf %177, %178 : vector<2x512xf32>
    %180 = vector.extract_strided_slice %179 {offsets = [0, 0], sizes = [2, 128], strides = [1, 1]} : vector<2x512xf32> to vector<2x128xf32>
    %181 = arith.negf %180 : vector<2x128xf32>
    %182 = math.exp %181 : vector<2x128xf32>
    %cst_34 = arith.constant 1.000000e+00 : f32
    %183 = vector.broadcast %cst_34 : f32 to vector<2x128xf32>
    %184 = arith.addf %183, %182 : vector<2x128xf32>
    %185 = arith.divf %183, %184 : vector<2x128xf32>
    %186 = vector.extract_strided_slice %179 {offsets = [0, 128], sizes = [2, 128], strides = [1, 1]} : vector<2x512xf32> to vector<2x128xf32>
    %187 = arith.negf %186 : vector<2x128xf32>
    %188 = math.exp %187 : vector<2x128xf32>
    %cst_35 = arith.constant 1.000000e+00 : f32
    %189 = vector.broadcast %cst_35 : f32 to vector<2x128xf32>
    %190 = arith.addf %189, %188 : vector<2x128xf32>
    %191 = arith.divf %189, %190 : vector<2x128xf32>
    %192 = vector.extract_strided_slice %179 {offsets = [0, 256], sizes = [2, 128], strides = [1, 1]} : vector<2x512xf32> to vector<2x128xf32>
    %193 = math.tanh %192 : vector<2x128xf32>
    %194 = vector.extract_strided_slice %179 {offsets = [0, 384], sizes = [2, 128], strides = [1, 1]} : vector<2x512xf32> to vector<2x128xf32>
    %195 = arith.negf %194 : vector<2x128xf32>
    %196 = math.exp %195 : vector<2x128xf32>
    %cst_36 = arith.constant 1.000000e+00 : f32
    %197 = vector.broadcast %cst_36 : f32 to vector<2x128xf32>
    %198 = arith.addf %197, %196 : vector<2x128xf32>
    %199 = arith.divf %197, %198 : vector<2x128xf32>
    %200 = arith.mulf %191, %174 : vector<2x128xf32>
    %201 = arith.mulf %185, %193 : vector<2x128xf32>
    %202 = arith.addf %200, %201 : vector<2x128xf32>
    %203 = math.tanh %202 : vector<2x128xf32>
    %204 = arith.mulf %199, %203 : vector<2x128xf32>
    %cst_37 = arith.constant dense<0.000000e+00> : vector<2x512xf32>
    %205 = tpu.matmul %204, %6, %cst_37 {dimension_numbers = #tpu.dot_dimension_numbers<[1], [0], [0], [1], [0, 0, 1, 1], [], []>} : vector<2x128xf32>, vector<128x512xf32>, vector<2x512xf32> -> vector<2x512xf32>
    %206 = vector.extract_strided_slice %5 {offsets = [14, 0], sizes = [2, 512], strides = [1, 1]} : vector<16x512xf32> to vector<2x512xf32>
    %207 = arith.addf %205, %206 : vector<2x512xf32>
    %208 = vector.extract_strided_slice %207 {offsets = [0, 0], sizes = [2, 128], strides = [1, 1]} : vector<2x512xf32> to vector<2x128xf32>
    %209 = arith.negf %208 : vector<2x128xf32>
    %210 = math.exp %209 : vector<2x128xf32>
    %cst_38 = arith.constant 1.000000e+00 : f32
    %211 = vector.broadcast %cst_38 : f32 to vector<2x128xf32>
    %212 = arith.addf %211, %210 : vector<2x128xf32>
    %213 = arith.divf %211, %212 : vector<2x128xf32>
    %214 = vector.extract_strided_slice %207 {offsets = [0, 128], sizes = [2, 128], strides = [1, 1]} : vector<2x512xf32> to vector<2x128xf32>
    %215 = arith.negf %214 : vector<2x128xf32>
    %216 = math.exp %215 : vector<2x128xf32>
    %cst_39 = arith.constant 1.000000e+00 : f32
    %217 = vector.broadcast %cst_39 : f32 to vector<2x128xf32>
    %218 = arith.addf %217, %216 : vector<2x128xf32>
    %219 = arith.divf %217, %218 : vector<2x128xf32>
    %220 = vector.extract_strided_slice %207 {offsets = [0, 256], sizes = [2, 128], strides = [1, 1]} : vector<2x512xf32> to vector<2x128xf32>
    %221 = math.tanh %220 : vector<2x128xf32>
    %222 = vector.extract_strided_slice %207 {offsets = [0, 384], sizes = [2, 128], strides = [1, 1]} : vector<2x512xf32> to vector<2x128xf32>
    %223 = arith.negf %222 : vector<2x128xf32>
    %224 = math.exp %223 : vector<2x128xf32>
    %cst_40 = arith.constant 1.000000e+00 : f32
    %225 = vector.broadcast %cst_40 : f32 to vector<2x128xf32>
    %226 = arith.addf %225, %224 : vector<2x128xf32>
    %227 = arith.divf %225, %226 : vector<2x128xf32>
    %228 = arith.mulf %219, %202 : vector<2x128xf32>
    %229 = arith.mulf %213, %221 : vector<2x128xf32>
    %230 = arith.addf %228, %229 : vector<2x128xf32>
    %231 = math.tanh %230 : vector<2x128xf32>
    %232 = arith.mulf %227, %231 : vector<2x128xf32>
    %c0_41 = arith.constant 0 : index
    %c0_42 = arith.constant 0 : index
    %233 = vector.load %arg4[%c0_41, %c0_42] : memref<128x128xf32, #tpu.memory_space<vmem>>, vector<128x128xf32>
    %cst_43 = arith.constant dense<0.000000e+00> : vector<2x128xf32>
    %234 = tpu.matmul %232, %233, %cst_43 {dimension_numbers = #tpu.dot_dimension_numbers<[1], [0], [0], [1], [0, 0, 1, 1], [], []>} : vector<2x128xf32>, vector<128x128xf32>, vector<2x128xf32> -> vector<2x128xf32>
    %c0_44 = arith.constant 0 : index
    %c0_45 = arith.constant 0 : index
    %235 = vector.load %arg5[%c0_44, %c0_45] : memref<1x128xf32, #tpu.memory_space<vmem>>, vector<1x128xf32>
    %236 = vector.broadcast %235 : vector<1x128xf32> to vector<2x128xf32>
    %237 = arith.addf %234, %236 : vector<2x128xf32>
    %c0_46 = arith.constant 0 : index
    %c0_47 = arith.constant 0 : index
    %238 = vector.load %arg6[%c0_46, %c0_47] : memref<128x6xf32, #tpu.memory_space<vmem>>, vector<128x6xf32>
    %cst_48 = arith.constant dense<0.000000e+00> : vector<2x6xf32>
    %239 = tpu.matmul %237, %238, %cst_48 {dimension_numbers = #tpu.dot_dimension_numbers<[1], [0], [0], [1], [0, 0, 1, 1], [], []>} : vector<2x128xf32>, vector<128x6xf32>, vector<2x6xf32> -> vector<2x6xf32>
    %c0_49 = arith.constant 0 : index
    %c0_50 = arith.constant 0 : index
    %240 = vector.load %arg7[%c0_49, %c0_50] : memref<1x6xf32, #tpu.memory_space<vmem>>, vector<1x6xf32>
    %241 = vector.broadcast %240 : vector<1x6xf32> to vector<2x6xf32>
    %242 = arith.addf %239, %241 : vector<2x6xf32>
    %c0_51 = arith.constant 0 : index
    %c0_52 = arith.constant 0 : index
    %243 = vector.load %arg8[%c0_51, %c0_52] : memref<2x6xf32, #tpu.memory_space<vmem>>, vector<2x6xf32>
    tpu.vector_store %arg8[%c0_51, %c0_52], %242 {strides = array<i32>} : memref<2x6xf32, #tpu.memory_space<vmem>>, vector<2x6xf32>,
    return
  }
}

</mosaic_0001>

<bundles_post_ra>
// kernel: tpu_custom_call.1
= control target key start
LH: loop header
LB: loop body
LE: loop exit
PB: predicated region body
PF: predicated region fallthrough
CT: control target
= control target key end

     0   :  { %13 = vsyncpa [#allocation3], 0  ;;  %s3398_s0 = inlined_call_operand.vmem [shape: f32[16,6], index: 0, kind: input, shape index: {}]   ;;  %s3399_s1 = inlined_call_operand.vmem [shape: f32[6,512], index: 1, kind: input, shape index: {}]   ;;  %s3400_s2 = inlined_call_operand.hbm [shape: f32[128,512], index: 2, kind: input, shape index: {}]   ;;  %s3401_s3 = inlined_call_operand.hbm [shape: f32[1,512], index: 3, kind: input, shape index: {}]   ;;  %s3402_s4 = inlined_call_operand.vmem [shape: f32[128,128], index: 4, kind: input, shape index: {}]   ;;  %s3403_s5 = inlined_call_operand.vmem [shape: f32[1,128], index: 5, kind: input, shape index: {}]   ;;  %s3404_s6 = inlined_call_operand.vmem [shape: f32[128,6], index: 6, kind: input, shape index: {}]   ;;  %s3405_s7 = inlined_call_operand.vmem [shape: f32[1,6], index: 7, kind: input, shape index: {}]   ;;  %s3406_s8 = inlined_call_operand.hbm [shape: f32[2,6], index: 8, kind: output, shape index: {}]  }
   0x1   :  { %14 = vsyncpa [#allocation6], 0 }
   0x2   :  { %15 = vsyncpa [#allocation4], 0  ;;  %s2313_s27 = smov [#allocation2]  }
   0x3   :  { %s25_s28 = sshll.u32 %s2313_s27, 4  ;;  %s26_s28 = int_to_ptr.vmem [resolvable:$true] %s25_s28 }
   0x4   :  { %s2255_s29 = scalar_lea.vmem %s26_s28, 8192  ;;  %p2260_p1 = scmp.lt.s32.totalorder %s26_s28, %s26_s28 }
   0x5   :  { %p2256_p0 = scmp.ne.s32.totalorder %s26_s28, %s2255_s29  ;;  %p2261_p2 = scmp.lt.s32.totalorder %s2255_s29, %s2255_s29 }
   0x7   :  { %p2262_p3 = por %p2261_p2, %p2260_p1 }
   0x9   :  { %p2263_p4 = pnand %p2262_p3, %p2256_p0 }
   0xb   :  { %2266 = shalt.err (!%p2263_p4)
}
   0xc   :  { %s2314_s30 = smov 512   ;;  %s2315_s9 = smov 32  }
   0xd   :  { %31 = dma.hbm_to_vmem [thread:$0]  %s3400_s2, 8192, %s26_s28, [#allocation3], %s2314_s30, %s2314_s30, %s2315_s9  }
   0xe   :  { %s2316_s12 = smov [#allocation5]  }
   0xf   :  { %s38_s13 = sshll.u32 %s2316_s12, 4  ;;  %s39_s13 = int_to_ptr.vmem [resolvable:$true] %s38_s13 }
  0x10   :  { %s2275_s14 = scalar_lea.vmem %s39_s13, 64  ;;  %p2280_p6 = scmp.lt.s32.totalorder %s39_s13, %s39_s13 }
  0x11   :  { %p2276_p5 = scmp.ne.s32.totalorder %s39_s13, %s2275_s14  ;;  %p2281_p7 = scmp.lt.s32.totalorder %s2275_s14, %s2275_s14 }
  0x13   :  { %p2282_p8 = por %p2281_p7, %p2280_p6 }
  0x15   :  { %p2283_p9 = pnand %p2282_p8, %p2276_p5 }
  0x17   :  { %2286 = shalt.err (!%p2283_p9)
}
  0x18   :  { %41 = dma.hbm_to_vmem [thread:$0]  %s3401_s3, 64, %s39_s13, [#allocation6]  }
  0x19   :  { %2307 = dma.done.wait [#allocation3], 8192  }
  0x1a   :  { %2308 = vsyncadd [#allocation3], 4294959104 }
  0x1b   :  { %2309 = dma.done.wait [#allocation6], 64  }
  0x1c   :  { %2310 = vsyncadd [#allocation6], 4294967232  ;;  %v3409_v0 = vmov 0.0   ;;  %vm91_vm0 = vcmask 1045504   ;;  %vm84_vm1 = vcmask 48128   ;;  %v56_v5 = vld [vmem:[%s3398_s0] sm:$0xff] }
  0x1d   :  { %168 = vmatprep.mubr.f32.mxu0 %v3409_v0  ;;  %245 = vmatprep.mubr.f32.mxu1 %v3409_v0  ;;  %v59_v1 = vld [vmem:[%s3399_s1 + $0x8] sm:$0x3f]  ;;  %v61_v2 = vld [vmem:[%s3399_s1 + $0x18] sm:$0x3f]  ;;  %v58_v3 = vld [vmem:[%s3399_s1] sm:$0x3f] }
  0x1e   :  { %1910 = vmatprep.subr.msk.mxu0 %vm91_vm0, %v59_v1  ;;  %1914 = vmatprep.subr.msk.mxu1 %vm91_vm0, %v61_v2  ;;  %v60_v4 = vld [vmem:[%s3399_s1 + $0x10] sm:$0x3f]  ;;  %v2388_v6 = vld [vmem:[#allocation2 + $0x1e8] sm:$0xff]  ;;  %v2390_v7 = vld [vmem:[#allocation2 + $0x1f8] sm:$0xff]  ;;  %vm2318_vm2 = vmmov 0   ;;  %s2319_s2 = smov [#allocation7]  }
  0x1f   :  { %3506 = vst [vmem:[#allocation11_spill] sm:$0xff] %v2388_v6  ;;  %1911 = vmatpush1.msk.msra.mxu0 %vm91_vm0, %v58_v3  ;;  %1915 = vmatpush1.msk.msra.mxu1 %vm91_vm0, %v60_v4  ;;  %3507 = vst [vmem:[#allocation12_spill] sm:$0xff] %v2390_v7  ;;  %v2392_v8 = vld [vmem:[#allocation2 + $0x1e0] sm:$0xff]  ;;  %v2394_v9 = vld [vmem:[#allocation2 + $0x1f0] sm:$0xff]  ;;  %s1900_s17 = sshll.u32 %s2319_s2, 4  ;;  %vm1892_vm3 = vcmask 41984   ;;  %s1901_s17 = int_to_ptr.vmem [resolvable:$true] %s1900_s17 }
  0x20   :  { %1912 = vmatmul.mubr.msk.f32.vlgmr.msra.gmra.mxu0 %vm84_vm1, %v56_v5  ;;  %322 = vmatprep.subr.mxu0 %v2388_v6  ;;  %v2398_v10 = vld [vmem:[#allocation2 + $0x1c8] sm:$0xff]  ;;  %v2400_v11 = vld [vmem:[#allocation2 + $0x1d8] sm:$0xff]  ;;  %v2404_v12 = vld [vmem:[#allocation2 + $0x1c0] sm:$0xff]  ;;  %p2292_p11 = scmp.lt.s32.totalorder %s1901_s17, %s1901_s17 }
  0x21   :  { %393 = vmatprep.subr.mxu1 %v2390_v7  ;;  %1916 = vmatmul.mubr.msk.f32.vlgmr.msra.gmra.mxu1 %vm84_vm1, %v56_v5  ;;  %v2406_v13 = vld [vmem:[#allocation2 + $0x1d0] sm:$0xff]  ;;  %v2410_v14 = vld [vmem:[#allocation2 + $0x1a8] sm:$0xff]  ;;  %v2412_v15 = vld [vmem:[#allocation2 + $0x1b8] sm:$0xff] }
  0x22   :  { %323 = vmatpush1.msra.mxu0 %v2392_v8  ;;  %394 = vmatpush1.msra.mxu1 %v2394_v9  ;;  %v2416_v16 = vld [vmem:[#allocation2 + $0x1a0] sm:$0xff]  ;;  %v2418_v17 = vld [vmem:[#allocation2 + $0x1b0] sm:$0xff]  ;;  %v2422_v18 = vld [vmem:[#allocation2 + $0x188] sm:$0xff] }
  0x23   :  { %324 = vmatprep.subr.mxu0 %v2398_v10  ;;  %395 = vmatprep.subr.mxu1 %v2400_v11  ;;  %v2424_v19 = vld [vmem:[#allocation2 + $0x198] sm:$0xff]  ;;  %v2428_v20 = vld [vmem:[#allocation2 + $0x180] sm:$0xff]  ;;  %v2430_v21 = vld [vmem:[#allocation2 + $0x190] sm:$0xff] }
  0x24   :  { %325 = vmatpush1.msra.mxu0 %v2404_v12  ;;  %396 = vmatpush1.msra.mxu1 %v2406_v13  ;;  %v2434_v22 = vld [vmem:[#allocation2 + $0x168] sm:$0xff]  ;;  %v2436_v23 = vld [vmem:[#allocation2 + $0x178] sm:$0xff]  ;;  %v2440_v24 = vld [vmem:[#allocation2 + $0x160] sm:$0xff] }
  0x25   :  { %326 = vmatprep.subr.mxu0 %v2410_v14  ;;  %397 = vmatprep.subr.mxu1 %v2412_v15  ;;  %v2442_v25 = vld [vmem:[#allocation2 + $0x170] sm:$0xff]  ;;  %v2446_v26 = vld [vmem:[#allocation2 + $0x148] sm:$0xff]  ;;  %v2448_v27 = vld [vmem:[#allocation2 + $0x158] sm:$0xff] }
  0x26   :  { %327 = vmatpush1.msra.mxu0 %v2416_v16  ;;  %398 = vmatpush1.msra.mxu1 %v2418_v17  ;;  %v2452_v28 = vld [vmem:[#allocation2 + $0x140] sm:$0xff]  ;;  %v2454_v29 = vld [vmem:[#allocation2 + $0x150] sm:$0xff]  ;;  %v2458_v30 = vld [vmem:[#allocation2 + $0x128] sm:$0xff] }
  0x27   :  { %328 = vmatprep.subr.mxu0 %v2422_v18  ;;  %399 = vmatprep.subr.mxu1 %v2424_v19  ;;  %v2460_v31 = vld [vmem:[#allocation2 + $0x138] sm:$0xff]  ;;  %v2464_v32 = vld [vmem:[#allocation2 + $0x120] sm:$0xff]  ;;  %v2466_v33 = vld [vmem:[#allocation2 + $0x130] sm:$0xff] }
  0x28   :  { %329 = vmatpush1.msra.mxu0 %v2428_v20  ;;  %400 = vmatpush1.msra.mxu1 %v2430_v21  ;;  %v2470_v34 = vld [vmem:[#allocation2 + $0x108] sm:$0xff]  ;;  %v2472_v35 = vld [vmem:[#allocation2 + $0x118] sm:$0xff]  ;;  %v2476_v36 = vld [vmem:[#allocation2 + $0x100] sm:$0xff] }
  0x29   :  { %330 = vmatprep.subr.mxu0 %v2434_v22  ;;  %401 = vmatprep.subr.mxu1 %v2436_v23  ;;  %v2478_v37 = vld [vmem:[#allocation2 + $0x110] sm:$0xff]  ;;  %v2482_v38 = vld [vmem:[#allocation2 + $0xe8] sm:$0xff]  ;;  %v2484_v39 = vld [vmem:[#allocation2 + $0xf8] sm:$0xff] }
  0x2a   :  { %331 = vmatpush1.msra.mxu0 %v2440_v24  ;;  %402 = vmatpush1.msra.mxu1 %v2442_v25  ;;  %v2488_v40 = vld [vmem:[#allocation2 + $0xe0] sm:$0xff]  ;;  %v2490_v41 = vld [vmem:[#allocation2 + $0xf0] sm:$0xff]  ;;  %v2494_v42 = vld [vmem:[#allocation2 + $0xc8] sm:$0xff] }
  0x2b   :  { %332 = vmatprep.subr.mxu0 %v2446_v26  ;;  %403 = vmatprep.subr.mxu1 %v2448_v27  ;;  %v2496_v43 = vld [vmem:[#allocation2 + $0xd8] sm:$0xff]  ;;  %v2500_v44 = vld [vmem:[#allocation2 + $0xc0] sm:$0xff]  ;;  %v2502_v45 = vld [vmem:[#allocation2 + $0xd0] sm:$0xff] }
  0x2c   :  { %333 = vmatpush1.msra.mxu0 %v2452_v28  ;;  %404 = vmatpush1.msra.mxu1 %v2454_v29  ;;  %v2506_v46 = vld [vmem:[#allocation2 + $0xa8] sm:$0xff]  ;;  %v2508_v47 = vld [vmem:[#allocation2 + $0xb8] sm:$0xff]  ;;  %v2512_v48 = vld [vmem:[#allocation2 + $0xa0] sm:$0xff] }
  0x2d   :  { %334 = vmatprep.subr.mxu0 %v2458_v30  ;;  %405 = vmatprep.subr.mxu1 %v2460_v31  ;;  %3508 = vst [vmem:[#allocation13_spill] sm:$0xff] %v2512_v48  ;;  %v2514_v49 = vld [vmem:[#allocation2 + $0xb0] sm:$0xff]  ;;  %v2518_v50 = vld [vmem:[#allocation2 + $0x88] sm:$0xff]  ;;  %v2520_v51 = vld [vmem:[#allocation2 + $0x98] sm:$0xff] }
  0x2e   :  { %335 = vmatpush1.msra.mxu0 %v2464_v32  ;;  %406 = vmatpush1.msra.mxu1 %v2466_v33  ;;  %3509 = vst [vmem:[#allocation14_spill] sm:$0xff] %v2514_v49  ;;  %3510 = vst [vmem:[#allocation15_spill] sm:$0xff] %v2518_v50  ;;  %v2524_v52 = vld [vmem:[#allocation2 + $0x80] sm:$0xff]  ;;  %v2526_v53 = vld [vmem:[#allocation2 + $0x90] sm:$0xff] }
  0x2f   :  { %336 = vmatprep.subr.mxu0 %v2470_v34  ;;  %407 = vmatprep.subr.mxu1 %v2472_v35  ;;  %3511 = vst [vmem:[#allocation16_spill] sm:$0xff] %v2520_v51  ;;  %3512 = vst [vmem:[#allocation17_spill] sm:$0xff] %v2524_v52  ;;  %v2530_v54 = vld [vmem:[#allocation2 + $0x68] sm:$0xff]  ;;  %v2532_v55 = vld [vmem:[#allocation2 + $0x78] sm:$0xff] }
  0x30   :  { %337 = vmatpush1.msra.mxu0 %v2476_v36  ;;  %408 = vmatpush1.msra.mxu1 %v2478_v37  ;;  %3513 = vst [vmem:[#allocation18_spill] sm:$0xff] %v2526_v53  ;;  %3514 = vst [vmem:[#allocation19_spill] sm:$0xff] %v2530_v54  ;;  %v2536_v56 = vld [vmem:[#allocation2 + $0x60] sm:$0xff]  ;;  %v2540_v57 = vld [vmem:[#allocation2 + $0x70] sm:$0xff] }
  0x31   :  { %338 = vmatprep.subr.mxu0 %v2482_v38  ;;  %409 = vmatprep.subr.mxu1 %v2484_v39  ;;  %3515 = vst [vmem:[#allocation20_spill] sm:$0xff] %v2532_v55  ;;  %3516 = vst [vmem:[#allocation21_spill] sm:$0xff] %v2536_v56  ;;  %v57_v58 = vld [vmem:[%s3398_s0 + $0x8] sm:$0xff]  ;;  %v2549_v60 = vld [vmem:[#allocation2 + $0x58] sm:$0xff] }
  0x32   :  { %339 = vmatpush1.msra.mxu0 %v2488_v40  ;;  %410 = vmatpush1.msra.mxu1 %v2490_v41  ;;  %3517 = vst [vmem:[#allocation22_spill] sm:$0xff] %v2540_v57  ;;  %v2547_v59 = vld [vmem:[#allocation2 + $0x48] sm:$0xff]  ;;  %3519 = vst [vmem:[#allocation24_spill] sm:$0xff] %v2549_v60  ;;  %v2553_v61 = vld [vmem:[#allocation2 + $0x40] sm:$0xff] }
  0x33   :  { %340 = vmatprep.subr.mxu0 %v2494_v42  ;;  %411 = vmatprep.subr.mxu1 %v2496_v43  ;;  %3518 = vst [vmem:[#allocation23_spill] sm:$0xff] %v2547_v59  ;;  %3520 = vst [vmem:[#allocation25_spill] sm:$0xff] %v2553_v61  ;;  %v2557_v62 = vld [vmem:[#allocation2 + $0x50] sm:$0xff]  ;;  %v2559_v63 = vld [vmem:[#allocation2 + $0x28] sm:$0xff] }
  0x34   :  { %341 = vmatpush1.msra.mxu0 %v2500_v44  ;;  %412 = vmatpush1.msra.mxu1 %v2502_v45  ;;  %3521 = vst [vmem:[#allocation26_spill] sm:$0xff] %v2557_v62  ;;  %3522 = vst [vmem:[#allocation27_spill] sm:$0xff] %v2559_v63  ;;  %v2563_v1 = vld [vmem:[#allocation2 + $0x38] sm:$0xff]  ;;  %v2567_v2 = vld [vmem:[#allocation2 + $0x20] sm:$0xff] }
  0x35   :  { %342 = vmatprep.subr.mxu0 %v2506_v46  ;;  %413 = vmatprep.subr.mxu1 %v2508_v47  ;;  %3523 = vst [vmem:[#allocation28_spill] sm:$0xff] %v2563_v1  ;;  %3524 = vst [vmem:[#allocation29_spill] sm:$0xff] %v2567_v2  ;;  %v2569_v3 = vld [vmem:[#allocation2 + $0x30] sm:$0xff]  ;;  %v2573_v4 = vld [vmem:[#allocation2 + $0x8] sm:$0xff] }
  0x36   :  { %343 = vmatpush1.msra.mxu0 %v2512_v48  ;;  %414 = vmatpush1.msra.mxu1 %v2514_v49  ;;  %3525 = vst [vmem:[#allocation30_spill] sm:$0xff] %v2569_v3  ;;  %3526 = vst [vmem:[#allocation31_spill] sm:$0xff] %v2573_v4  ;;  %v2575_v5 = vld [vmem:[#allocation2 + $0x18] sm:$0xff] }
  0x37   :  { %344 = vmatprep.subr.mxu0 %v2518_v50  ;;  %415 = vmatprep.subr.mxu1 %v2520_v51  ;;  %3527 = vst [vmem:[#allocation32_spill] sm:$0xff] %v2575_v5 }
  0x38   :  { %345 = vmatpush1.msra.mxu0 %v2524_v52  ;;  %416 = vmatpush1.msra.mxu1 %v2526_v53 }
  0x39   :  { %346 = vmatprep.subr.mxu0 %v2530_v54  ;;  %417 = vmatprep.subr.mxu1 %v2532_v55 }
  0x3a   :  { %174 = vmatprep.mubr.f32.mxu0 %v3409_v0  ;;  %347 = vmatpush1.msra.mxu0 %v2536_v56 }
  0x3b   :  { %418 = vmatpush1.msra.mxu1 %v2540_v57  ;;  %1913 = vmatmul.mubr.msk.f32.gmra.mxu0 %vm84_vm1, %v57_v58 }
  0x3c   :  { %348 = vmatprep.subr.mxu0 %v2547_v59  ;;  %419 = vmatprep.subr.mxu1 %v2549_v60  ;;  %v2579_v60 = vld [vmem:[#allocation2] sm:$0xff] }
  0x3d   :  { %251 = vmatprep.mubr.f32.mxu1 %v3409_v0  ;;  %349 = vmatpush1.msra.mxu0 %v2553_v61  ;;  %3528 = vst [vmem:[#allocation33_spill] sm:$0xff] %v2579_v60  ;;  %v2583_v0 = vld [vmem:[#allocation2 + $0x10] sm:$0xff] }
  0x3e   :  { %420 = vmatpush1.msra.mxu1 %v2557_v62  ;;  %350 = vmatprep.subr.mxu0 %v2559_v63  ;;  %3529 = vst [vmem:[#allocation34_spill] sm:$0xff] %v2583_v0  ;;  %v3530_v63 = vmov 0.0  }
  0x3f   :  { %1917 = vmatmul.mubr.msk.f32.gmra.mxu1 %vm84_vm1, %v57_v58  ;;  %421 = vmatprep.subr.mxu1 %v2563_v1  ;;  %v3531_v58 = vld [vmem:[#allocation24_spill] sm:$0xff] }
  0x40   :  { %351 = vmatpush1.msra.mxu0 %v2567_v2  ;;  %422 = vmatpush1.msra.mxu1 %v2569_v3 }
  0x41   :  { %352 = vmatprep.subr.mxu0 %v2573_v4  ;;  %423 = vmatprep.subr.mxu1 %v2575_v5 }
  0x42   :  { %353 = vmatpush1.msra.mxu0 %v2579_v60  ;;  %386 = vmatprep.mubr.f32.mxu0 %v3530_v63 }
  0x43   :  { %424 = vmatpush1.msra.mxu1 %v2583_v0  ;;  %457 = vmatprep.mubr.f32.mxu1 %v3530_v63 }
  0x44   :  { %387 = vmatmul.mubr.f32.vlgmr.msra.gmra.mxu0 %v3530_v63  ;;  %458 = vmatmul.mubr.f32.vlgmr.msra.gmra.mxu1 %v3530_v63 }
  0x45   :  { %500 = vmatprep.subr.mxu0 %v2388_v6  ;;  %571 = vmatprep.subr.mxu1 %v2390_v7 }
  0x46   :  { %501 = vmatpush1.msra.mxu0 %v2392_v8  ;;  %572 = vmatpush1.msra.mxu1 %v2394_v9 }
  0x47   :  { %502 = vmatprep.subr.mxu0 %v2398_v10  ;;  %573 = vmatprep.subr.mxu1 %v2400_v11 }
  0x48   :  { %503 = vmatpush1.msra.mxu0 %v2404_v12  ;;  %574 = vmatpush1.msra.mxu1 %v2406_v13 }
  0x49   :  { %504 = vmatprep.subr.mxu0 %v2410_v14  ;;  %575 = vmatprep.subr.mxu1 %v2412_v15 }
  0x4a   :  { %505 = vmatpush1.msra.mxu0 %v2416_v16  ;;  %576 = vmatpush1.msra.mxu1 %v2418_v17 }
  0x4b   :  { %506 = vmatprep.subr.mxu0 %v2422_v18  ;;  %577 = vmatprep.subr.mxu1 %v2424_v19 }
  0x4c   :  { %507 = vmatpush1.msra.mxu0 %v2428_v20  ;;  %578 = vmatpush1.msra.mxu1 %v2430_v21 }
  0x4d   :  { %508 = vmatprep.subr.mxu0 %v2434_v22  ;;  %579 = vmatprep.subr.mxu1 %v2436_v23 }
  0x4e   :  { %509 = vmatpush1.msra.mxu0 %v2440_v24  ;;  %580 = vmatpush1.msra.mxu1 %v2442_v25 }
  0x4f   :  { %510 = vmatprep.subr.mxu0 %v2446_v26  ;;  %581 = vmatprep.subr.mxu1 %v2448_v27 }
  0x50   :  { %511 = vmatpush1.msra.mxu0 %v2452_v28  ;;  %582 = vmatpush1.msra.mxu1 %v2454_v29 }
  0x51   :  { %512 = vmatprep.subr.mxu0 %v2458_v30  ;;  %583 = vmatprep.subr.mxu1 %v2460_v31 }
  0x52   :  { %513 = vmatpush1.msra.mxu0 %v2464_v32  ;;  %584 = vmatpush1.msra.mxu1 %v2466_v33 }
  0x53   :  { %514 = vmatprep.subr.mxu0 %v2470_v34  ;;  %585 = vmatprep.subr.mxu1 %v2472_v35 }
  0x54   :  { %515 = vmatpush1.msra.mxu0 %v2476_v36  ;;  %586 = vmatpush1.msra.mxu1 %v2478_v37 }
  0x55   :  { %516 = vmatprep.subr.mxu0 %v2482_v38  ;;  %587 = vmatprep.subr.mxu1 %v2484_v39 }
  0x56   :  { %517 = vmatpush1.msra.mxu0 %v2488_v40  ;;  %588 = vmatpush1.msra.mxu1 %v2490_v41 }
  0x57   :  { %518 = vmatprep.subr.mxu0 %v2494_v42  ;;  %589 = vmatprep.subr.mxu1 %v2496_v43 }
  0x58   :  { %519 = vmatpush1.msra.mxu0 %v2500_v44  ;;  %590 = vmatpush1.msra.mxu1 %v2502_v45 }
  0x59   :  { %520 = vmatprep.subr.mxu0 %v2506_v46  ;;  %591 = vmatprep.subr.mxu1 %v2508_v47 }
  0x5a   :  { %521 = vmatpush1.msra.mxu0 %v2512_v48  ;;  %592 = vmatpush1.msra.mxu1 %v2514_v49 }
  0x5b   :  { %522 = vmatprep.subr.mxu0 %v2518_v50  ;;  %593 = vmatprep.subr.mxu1 %v2520_v51  ;;  %v3532_v51 = vld [vmem:[#allocation27_spill] sm:$0xff] }
  0x5c   :  { %523 = vmatpush1.msra.mxu0 %v2524_v52  ;;  %594 = vmatpush1.msra.mxu1 %v2526_v53 }
  0x5d   :  { %524 = vmatprep.subr.mxu0 %v2530_v54  ;;  %595 = vmatprep.subr.mxu1 %v2532_v55 }
  0x5e   :  { %525 = vmatpush1.msra.mxu0 %v2536_v56  ;;  %596 = vmatpush1.msra.mxu1 %v2540_v57 }
  0x5f   :  { %526 = vmatprep.subr.mxu0 %v2547_v59  ;;  %597 = vmatprep.subr.mxu1 %v3531_v58 }
  0x60   :  { %527 = vmatpush1.msra.mxu0 %v2553_v61  ;;  %598 = vmatpush1.msra.mxu1 %v2557_v62  ;;  %v62_v62 = vld [vmem:[#allocation5] sm:$0xf] }
  0x61   :  { %528 = vmatprep.subr.mxu0 %v3532_v51  ;;  %599 = vmatprep.subr.mxu1 %v2563_v1  ;;  %v64_v1 = vlaneseq }
  0x62   :  { %529 = vmatpush1.msra.mxu0 %v2567_v2  ;;  %600 = vmatpush1.msra.mxu1 %v2569_v3 }
  0x63   :  { %530 = vmatprep.subr.mxu0 %v2573_v4  ;;  %601 = vmatprep.subr.mxu1 %v2575_v5  ;;  %v65_v2 = vshrl.u32 %v64_v1, 7 }
  0x64   :  { %531 = vmatpush1.msra.mxu0 %v2579_v60  ;;  %564 = vmatprep.mubr.f32.mxu0 %v3530_v63 }
  0x65   :  { %602 = vmatpush1.msra.mxu1 %v2583_v0  ;;  %635 = vmatprep.mubr.f32.mxu1 %v3530_v63  ;;  %v66_v3 = vsub.s32 0, %v65_v2  ;;  %v70_v4 = vsub.s32 1, %v65_v2  ;;  %v74_v60 = vsub.s32 2, %v65_v2  ;;  %v78_v56 = vsub.s32 3, %v65_v2 }
  0x66   :  { %674 = vmatprep.subr.mxu0 %v2388_v6  ;;  %745 = vmatprep.subr.mxu1 %v2390_v7 }
  0x67   :  { %v67_v58 = vrot.slane %v62_v62, %v66_v3  ;;  %v71_v57 = vrot.slane %v62_v62, %v70_v4  ;;  %v75_v6 = vrot.slane %v62_v62, %v74_v60  ;;  %v79_v1 = vrot.slane %v62_v62, %v78_v56 }
  0xe0   :  { %v170_v51 = vpop.f32.mrf.mxu0 }
  0xe1   :  { %v247_v5 = vpop.f32.mrf.mxu1  ;;  %v2669_v49 = vadd.f32 %v170_v51, %v67_v58 }
  0xe2   :  { %v172_v61 = vpop.f32.mrf.mxu0  ;;  %v2678_v51 = vadd.f32 %v247_v5, %v75_v6 }
  0xe3   :  { %v249_v63 = vpop.f32.mrf.mxu1  ;;  %3537 = vst [vmem:[#allocation39_spill] sm:$0xff] %v2669_v49  ;;  %v2671_v48 = vadd.f32 %v172_v61, %v71_v57 }
  0xe4   :  { %v2675_v56 = vadd.f32 %v249_v63, %v79_v1 }
  0xfb   :  { %v176_v59 = vpop.f32.mrf.mxu0 }
  0xfc   :  { %v2661_v0 = vadd.f32 %v176_v59, %v67_v58 }
  0xfd   :  { %v178_v55 = vpop.f32.mrf.mxu0 }
  0xfe   :  { %3533 = vst [vmem:[#allocation35_spill] sm:$0xff] %v2661_v0  ;;  %v2663_v54 = vadd.f32 %v178_v55, %v71_v57  ;;  %v3556_v0 = vld [vmem:[#allocation31_spill] sm:$0xff] }
  0xff   :  { %v253_v7 = vpop.f32.mrf.mxu1 }
 0x100   :  { %3534 = vst [vmem:[#allocation36_spill] sm:$0xff] %v2663_v54  ;;  %v2665_v53 = vadd.f32 %v253_v7, %v75_v6 }
 0x101   :  { %v255_v52 = vpop.f32.mrf.mxu1 }
 0x102   :  { %3535 = vst [vmem:[#allocation37_spill] sm:$0xff] %v2665_v53  ;;  %v2667_v50 = vadd.f32 %v255_v52, %v79_v1  ;;  %v3554_v53 = vld [vmem:[#allocation29_spill] sm:$0xff] }
 0x104   :  { %3536 = vst [vmem:[#allocation38_spill] sm:$0xff] %v2667_v50  ;;  %v388_v3 = vpop.f32.mrf.mxu0  ;;  %v459_v55 = vpop.f32.mrf.mxu1  ;;  %v3555_v50 = vld [vmem:[#allocation30_spill] sm:$0xff] }
 0x105   :  { %v389_v59 = vadd.f32 %v388_v3, %v2669_v49  ;;  %v460_v61 = vadd.f32 %v459_v55, %v2678_v51 }
 0x106   :  { %v390_v2 = vpop.f32.mrf.mxu0  ;;  %v461_v7 = vpop.f32.mrf.mxu1 }
 0x107   :  { %v1918_v4 = vmul.f32 -1.442695, %v389_v59  ;;  %v391_v60 = vadd.f32 %v390_v2, %v2671_v48  ;;  %v462_v52 = vadd.f32 %v461_v7, %v2675_v56 }
 0x109   :  { %2055 = vpow2.f32 %v1918_v4  ;;  %v1919_v54 = vmul.f32 -1.442695, %v391_v60  ;;  %v1920_v62 = vmul.f32 -1.442695, %v462_v52 }
 0x10b   :  { %2057 = vpow2.f32 %v1919_v54 }
 0x10c   :  { %2059 = vpow2.f32 %v1920_v62  ;;  %v3538_v62 = vld [vmem:[#allocation13_spill] sm:$0xff] }
 0x116   :  { %v2056_v57 = vpop.eup %2055 }
 0x117   :  { %v467_v58 = vadd.f32 1.0, %v2056_v57  ;;  %v3539_v57 = vld [vmem:[#allocation14_spill] sm:$0xff] }
 0x118   :  { %v2058_v3 = vpop.eup %2057 }
 0x119   :  { %2061 = vrcp.f32 %v467_v58  ;;  %v473_v59 = vadd.f32 1.0, %v2058_v3  ;;  %v2060_v2 = vpop.eup %2059  ;;  %v3541_v58 = vld [vmem:[#allocation16_spill] sm:$0xff]  ;;  %v3542_v3 = vld [vmem:[#allocation17_spill] sm:$0xff] }
 0x11a   :  { %2063 = vtanh.f32 %v460_v61  ;;  %v480_v1 = vadd.f32 1.0, %v2060_v2  ;;  %v3540_v61 = vld [vmem:[#allocation15_spill] sm:$0xff] }
 0x11b   :  { %2065 = vrcp.f32 %v473_v59  ;;  %v3543_v59 = vld [vmem:[#allocation18_spill] sm:$0xff]  ;;  %v3544_v2 = vld [vmem:[#allocation19_spill] sm:$0xff] }
 0x11c   :  { %2067 = vrcp.f32 %v480_v1  ;;  %v3548_v1 = vld [vmem:[#allocation23_spill] sm:$0xff] }
 0x126   :  { %v2062_v54 = vpop.eup %2061 }
 0x127   :  { %v2064_v4 = vpop.eup %2063 }
 0x128   :  { %v2066_v63 = vpop.eup %2065  ;;  %v484_v7 = vmul.f32 %v2064_v4, %v2062_v54  ;;  %v3545_v54 = vld [vmem:[#allocation20_spill] sm:$0xff]  ;;  %v3546_v4 = vld [vmem:[#allocation21_spill] sm:$0xff] }
 0x129   :  { %v483_v60 = vmul.f32 0.0, %v2066_v63  ;;  %v2068_v5 = vpop.eup %2067  ;;  %v3547_v63 = vld [vmem:[#allocation22_spill] sm:$0xff] }
 0x12b   :  { %v2681_v6 = vadd.f32 %v484_v7, %v483_v60  ;;  %v3549_v60 = vld [vmem:[#allocation24_spill] sm:$0xff]  ;;  %v3550_v7 = vld [vmem:[#allocation25_spill] sm:$0xff] }
 0x12d   :  { %2069 = vtanh.f32 %v2681_v6 }
 0x13a   :  { %v2070_v55 = vpop.eup %2069 }
 0x13b   :  { %v487_v52 = vmul.f32 %v2070_v55, %v2068_v5  ;;  %v3551_v5 = vld [vmem:[#allocation26_spill] sm:$0xff]  ;;  %v3552_v55 = vld [vmem:[#allocation27_spill] sm:$0xff] }
 0x13d   :  { %565 = vmatmul.mubr.f32.vlgmr.msra.gmra.mxu0 %v487_v52  ;;  %636 = vmatmul.mubr.f32.vlgmr.msra.gmra.mxu1 %v487_v52  ;;  %v3553_v52 = vld [vmem:[#allocation28_spill] sm:$0xff] }
 0x13e   :  { %675 = vmatpush1.msra.mxu0 %v2392_v8  ;;  %746 = vmatpush1.msra.mxu1 %v2394_v9 }
 0x13f   :  { %676 = vmatprep.subr.mxu0 %v2398_v10  ;;  %747 = vmatprep.subr.mxu1 %v2400_v11 }
 0x140   :  { %677 = vmatpush1.msra.mxu0 %v2404_v12  ;;  %748 = vmatpush1.msra.mxu1 %v2406_v13 }
 0x141   :  { %678 = vmatprep.subr.mxu0 %v2410_v14  ;;  %749 = vmatprep.subr.mxu1 %v2412_v15 }
 0x142   :  { %679 = vmatpush1.msra.mxu0 %v2416_v16  ;;  %750 = vmatpush1.msra.mxu1 %v2418_v17 }
 0x143   :  { %680 = vmatprep.subr.mxu0 %v2422_v18  ;;  %751 = vmatprep.subr.mxu1 %v2424_v19 }
 0x144   :  { %681 = vmatpush1.msra.mxu0 %v2428_v20  ;;  %752 = vmatpush1.msra.mxu1 %v2430_v21 }
 0x145   :  { %682 = vmatprep.subr.mxu0 %v2434_v22  ;;  %753 = vmatprep.subr.mxu1 %v2436_v23 }
 0x146   :  { %683 = vmatpush1.msra.mxu0 %v2440_v24  ;;  %754 = vmatpush1.msra.mxu1 %v2442_v25 }
 0x147   :  { %684 = vmatprep.subr.mxu0 %v2446_v26  ;;  %755 = vmatprep.subr.mxu1 %v2448_v27 }
 0x148   :  { %685 = vmatpush1.msra.mxu0 %v2452_v28  ;;  %756 = vmatpush1.msra.mxu1 %v2454_v29 }
 0x149   :  { %686 = vmatprep.subr.mxu0 %v2458_v30  ;;  %757 = vmatprep.subr.mxu1 %v2460_v31 }
 0x14a   :  { %687 = vmatpush1.msra.mxu0 %v2464_v32  ;;  %758 = vmatpush1.msra.mxu1 %v2466_v33 }
 0x14b   :  { %688 = vmatprep.subr.mxu0 %v2470_v34  ;;  %759 = vmatprep.subr.mxu1 %v2472_v35 }
 0x14c   :  { %689 = vmatpush1.msra.mxu0 %v2476_v36  ;;  %760 = vmatpush1.msra.mxu1 %v2478_v37 }
 0x14d   :  { %690 = vmatprep.subr.mxu0 %v2482_v38  ;;  %761 = vmatprep.subr.mxu1 %v2484_v39 }
 0x14e   :  { %691 = vmatpush1.msra.mxu0 %v2488_v40  ;;  %762 = vmatpush1.msra.mxu1 %v2490_v41 }
 0x14f   :  { %692 = vmatprep.subr.mxu0 %v2494_v42  ;;  %763 = vmatprep.subr.mxu1 %v2496_v43 }
 0x150   :  { %693 = vmatpush1.msra.mxu0 %v2500_v44  ;;  %764 = vmatpush1.msra.mxu1 %v2502_v45 }
 0x151   :  { %694 = vmatprep.subr.mxu0 %v2506_v46  ;;  %765 = vmatprep.subr.mxu1 %v2508_v47 }
 0x152   :  { %695 = vmatpush1.msra.mxu0 %v3538_v62  ;;  %766 = vmatpush1.msra.mxu1 %v3539_v57 }
 0x153   :  { %696 = vmatprep.subr.mxu0 %v3540_v61  ;;  %767 = vmatprep.subr.mxu1 %v3541_v58 }
 0x154   :  { %697 = vmatpush1.msra.mxu0 %v3542_v3  ;;  %768 = vmatpush1.msra.mxu1 %v3543_v59 }
 0x155   :  { %698 = vmatprep.subr.mxu0 %v3544_v2  ;;  %769 = vmatprep.subr.mxu1 %v3545_v54 }
 0x156   :  { %699 = vmatpush1.msra.mxu0 %v3546_v4  ;;  %770 = vmatpush1.msra.mxu1 %v3547_v63  ;;  %v3557_v4 = vld [vmem:[#allocation32_spill] sm:$0xff]  ;;  %v3558_v63 = vld [vmem:[#allocation33_spill] sm:$0xff] }
 0x157   :  { %700 = vmatprep.subr.mxu0 %v3548_v1  ;;  %771 = vmatprep.subr.mxu1 %v3549_v60  ;;  %v3559_v1 = vmov 0.0   ;;  %v3560_v60 = vld [vmem:[#allocation34_spill] sm:$0xff] }
 0x158   :  { %701 = vmatpush1.msra.mxu0 %v3550_v7  ;;  %772 = vmatpush1.msra.mxu1 %v3551_v5  ;;  %v3561_v5 = vld [vmem:[#allocation11_spill] sm:$0xff] }
 0x159   :  { %702 = vmatprep.subr.mxu0 %v3552_v55  ;;  %773 = vmatprep.subr.mxu1 %v3553_v52  ;;  %v3562_v55 = vld [vmem:[#allocation12_spill] sm:$0xff] }
 0x15a   :  { %703 = vmatpush1.msra.mxu0 %v3554_v53  ;;  %774 = vmatpush1.msra.mxu1 %v3555_v50  ;;  %v492_v53 = vrot.slane %v2669_v49, 2 }
 0x15b   :  { %704 = vmatprep.subr.mxu0 %v3556_v0  ;;  %775 = vmatprep.subr.mxu1 %v3557_v4  ;;  %v493_v0 = vrot.slane %v2671_v48, 2 }
 0x15c   :  { %705 = vmatpush1.msra.mxu0 %v3558_v63  ;;  %738 = vmatprep.mubr.f32.mxu0 %v3559_v1 }
 0x15d   :  { %776 = vmatpush1.msra.mxu1 %v3560_v60  ;;  %809 = vmatprep.mubr.f32.mxu1 %v3559_v1  ;;  %v495_v1 = vrot.slane %v2675_v56, 2 }
 0x15e   :  { %848 = vmatprep.subr.mxu0 %v3561_v5  ;;  %919 = vmatprep.subr.mxu1 %v3562_v55  ;;  %v494_v5 = vrot.slane %v2678_v51, 2 }
 0x1fd   :  { %v566_v52 = vpop.f32.mrf.mxu0  ;;  %v637_v63 = vpop.f32.mrf.mxu1 }
 0x1fe   :  { %v567_v50 = vadd.f32 %v566_v52, %v492_v53  ;;  %v638_v55 = vadd.f32 %v637_v63, %v494_v5  ;;  %v3566_v5 = vld [vmem:[#allocation19_spill] sm:$0xff] }
 0x1ff   :  { %v568_v7 = vpop.f32.mrf.mxu0  ;;  %v639_v60 = vpop.f32.mrf.mxu1 }
 0x200   :  { %v1921_v4 = vmul.f32 -1.442695, %v567_v50  ;;  %v569_v54 = vadd.f32 %v568_v7, %v493_v0  ;;  %v640_v59 = vadd.f32 %v639_v60, %v495_v1 }
 0x202   :  { %2071 = vpow2.f32 %v1921_v4  ;;  %v1922_v2 = vmul.f32 -1.442695, %v569_v54  ;;  %v1923_v3 = vmul.f32 -1.442695, %v640_v59 }
 0x204   :  { %2073 = vpow2.f32 %v1922_v2 }
 0x205   :  { %2075 = vtanh.f32 %v638_v55  ;;  %v3567_v55 = vld [vmem:[#allocation20_spill] sm:$0xff] }
 0x206   :  { %2077 = vpow2.f32 %v1923_v3  ;;  %v3565_v3 = vld [vmem:[#allocation18_spill] sm:$0xff] }
 0x20f   :  { %v2072_v49 = vpop.eup %2071 }
 0x210   :  { %v645_v58 = vadd.f32 1.0, %v2072_v49 }
 0x211   :  { %v2074_v53 = vpop.eup %2073 }
 0x212   :  { %2079 = vrcp.f32 %v645_v58  ;;  %v651_v50 = vadd.f32 1.0, %v2074_v53  ;;  %v2076_v0 = vpop.eup %2075  ;;  %v3564_v58 = vld [vmem:[#allocation17_spill] sm:$0xff] }
 0x213   :  { %v2078_v4 = vpop.eup %2077  ;;  %v3568_v53 = vld [vmem:[#allocation21_spill] sm:$0xff] }
 0x214   :  { %2081 = vrcp.f32 %v651_v50  ;;  %v658_v52 = vadd.f32 1.0, %v2078_v4  ;;  %v3569_v50 = vld [vmem:[#allocation22_spill] sm:$0xff]  ;;  %v3571_v4 = vld [vmem:[#allocation24_spill] sm:$0xff] }
 0x216   :  { %2083 = vrcp.f32 %v658_v52  ;;  %v3575_v52 = vld [vmem:[#allocation28_spill] sm:$0xff] }
 0x21f   :  { %v2080_v54 = vpop.eup %2079 }
 0x220   :  { %v662_v2 = vmul.f32 %v2080_v54, %v2076_v0  ;;  %v3570_v0 = vld [vmem:[#allocation23_spill] sm:$0xff]  ;;  %v3572_v54 = vld [vmem:[#allocation25_spill] sm:$0xff] }
 0x221   :  { %v2082_v7 = vpop.eup %2081 }
 0x222   :  { %v661_v1 = vmul.f32 %v2082_v7, %v2681_v6  ;;  %v3563_v6 = vld [vmem:[#allocation16_spill] sm:$0xff]  ;;  %v3574_v7 = vld [vmem:[#allocation27_spill] sm:$0xff] }
 0x223   :  { %v2084_v49 = vpop.eup %2083 }
 0x224   :  { %v2755_v60 = vadd.f32 %v662_v2, %v661_v1  ;;  %v3573_v2 = vld [vmem:[#allocation26_spill] sm:$0xff]  ;;  %v3576_v1 = vld [vmem:[#allocation29_spill] sm:$0xff] }
 0x226   :  { %2085 = vtanh.f32 %v2755_v60 }
 0x233   :  { %v2086_v59 = vpop.eup %2085 }
 0x234   :  { %v665_v63 = vmul.f32 %v2086_v59, %v2084_v49  ;;  %v3577_v49 = vld [vmem:[#allocation30_spill] sm:$0xff]  ;;  %v3578_v59 = vld [vmem:[#allocation31_spill] sm:$0xff] }
 0x236   :  { %739 = vmatmul.mubr.f32.vlgmr.msra.gmra.mxu0 %v665_v63  ;;  %810 = vmatmul.mubr.f32.vlgmr.msra.gmra.mxu1 %v665_v63  ;;  %v3579_v63 = vld [vmem:[#allocation32_spill] sm:$0xff] }
 0x237   :  { %849 = vmatpush1.msra.mxu0 %v2392_v8  ;;  %920 = vmatpush1.msra.mxu1 %v2394_v9 }
 0x238   :  { %850 = vmatprep.subr.mxu0 %v2398_v10  ;;  %921 = vmatprep.subr.mxu1 %v2400_v11 }
 0x239   :  { %851 = vmatpush1.msra.mxu0 %v2404_v12  ;;  %922 = vmatpush1.msra.mxu1 %v2406_v13 }
 0x23a   :  { %852 = vmatprep.subr.mxu0 %v2410_v14  ;;  %923 = vmatprep.subr.mxu1 %v2412_v15 }
 0x23b   :  { %853 = vmatpush1.msra.mxu0 %v2416_v16  ;;  %924 = vmatpush1.msra.mxu1 %v2418_v17 }
 0x23c   :  { %854 = vmatprep.subr.mxu0 %v2422_v18  ;;  %925 = vmatprep.subr.mxu1 %v2424_v19 }
 0x23d   :  { %855 = vmatpush1.msra.mxu0 %v2428_v20  ;;  %926 = vmatpush1.msra.mxu1 %v2430_v21 }
 0x23e   :  { %856 = vmatprep.subr.mxu0 %v2434_v22  ;;  %927 = vmatprep.subr.mxu1 %v2436_v23 }
 0x23f   :  { %857 = vmatpush1.msra.mxu0 %v2440_v24  ;;  %928 = vmatpush1.msra.mxu1 %v2442_v25 }
 0x240   :  { %858 = vmatprep.subr.mxu0 %v2446_v26  ;;  %929 = vmatprep.subr.mxu1 %v2448_v27 }
 0x241   :  { %859 = vmatpush1.msra.mxu0 %v2452_v28  ;;  %930 = vmatpush1.msra.mxu1 %v2454_v29 }
 0x242   :  { %860 = vmatprep.subr.mxu0 %v2458_v30  ;;  %931 = vmatprep.subr.mxu1 %v2460_v31 }
 0x243   :  { %861 = vmatpush1.msra.mxu0 %v2464_v32  ;;  %932 = vmatpush1.msra.mxu1 %v2466_v33 }
 0x244   :  { %862 = vmatprep.subr.mxu0 %v2470_v34  ;;  %933 = vmatprep.subr.mxu1 %v2472_v35 }
 0x245   :  { %863 = vmatpush1.msra.mxu0 %v2476_v36  ;;  %934 = vmatpush1.msra.mxu1 %v2478_v37 }
 0x246   :  { %864 = vmatprep.subr.mxu0 %v2482_v38  ;;  %935 = vmatprep.subr.mxu1 %v2484_v39 }
 0x247   :  { %865 = vmatpush1.msra.mxu0 %v2488_v40  ;;  %936 = vmatpush1.msra.mxu1 %v2490_v41 }
 0x248   :  { %866 = vmatprep.subr.mxu0 %v2494_v42  ;;  %937 = vmatprep.subr.mxu1 %v2496_v43 }
 0x249   :  { %867 = vmatpush1.msra.mxu0 %v2500_v44  ;;  %938 = vmatpush1.msra.mxu1 %v2502_v45 }
 0x24a   :  { %868 = vmatprep.subr.mxu0 %v2506_v46  ;;  %939 = vmatprep.subr.mxu1 %v2508_v47 }
 0x24b   :  { %869 = vmatpush1.msra.mxu0 %v3538_v62  ;;  %940 = vmatpush1.msra.mxu1 %v3539_v57 }
 0x24c   :  { %870 = vmatprep.subr.mxu0 %v3540_v61  ;;  %941 = vmatprep.subr.mxu1 %v3563_v6 }
 0x24d   :  { %871 = vmatpush1.msra.mxu0 %v3564_v58  ;;  %942 = vmatpush1.msra.mxu1 %v3565_v3 }
 0x24e   :  { %872 = vmatprep.subr.mxu0 %v3566_v5  ;;  %943 = vmatprep.subr.mxu1 %v3567_v55 }
 0x24f   :  { %873 = vmatpush1.msra.mxu0 %v3568_v53  ;;  %944 = vmatpush1.msra.mxu1 %v3569_v50  ;;  %v3580_v50 = vld [vmem:[#allocation33_spill] sm:$0xff] }
 0x250   :  { %874 = vmatprep.subr.mxu0 %v3570_v0  ;;  %945 = vmatprep.subr.mxu1 %v3571_v4  ;;  %v3581_v0 = vmov 0.0   ;;  %v3582_v4 = vld [vmem:[#allocation34_spill] sm:$0xff] }
 0x251   :  { %875 = vmatpush1.msra.mxu0 %v3572_v54  ;;  %946 = vmatpush1.msra.mxu1 %v3573_v2  ;;  %v3583_v2 = vld [vmem:[#allocation11_spill] sm:$0xff] }
 0x252   :  { %876 = vmatprep.subr.mxu0 %v3574_v7  ;;  %947 = vmatprep.subr.mxu1 %v3575_v52  ;;  %v3584_v7 = vld [vmem:[#allocation12_spill] sm:$0xff]  ;;  %v3585_v52 = vld [vmem:[#allocation39_spill] sm:$0xff] }
 0x253   :  { %877 = vmatpush1.msra.mxu0 %v3576_v1  ;;  %948 = vmatpush1.msra.mxu1 %v3577_v49  ;;  %v666_v1 = vrot.slane %v3585_v52, 4 }
 0x254   :  { %878 = vmatprep.subr.mxu0 %v3578_v59  ;;  %949 = vmatprep.subr.mxu1 %v3579_v63  ;;  %v667_v59 = vrot.slane %v2671_v48, 4 }
 0x255   :  { %879 = vmatpush1.msra.mxu0 %v3580_v50  ;;  %912 = vmatprep.mubr.f32.mxu0 %v3581_v0 }
 0x256   :  { %950 = vmatpush1.msra.mxu1 %v3582_v4  ;;  %983 = vmatprep.mubr.f32.mxu1 %v3581_v0  ;;  %v669_v0 = vrot.slane %v2675_v56, 4 }
 0x257   :  { %1014 = vmatprep.subr.mxu0 %v3583_v2  ;;  %1085 = vmatprep.subr.mxu1 %v3584_v7  ;;  %v668_v2 = vrot.slane %v2678_v51, 4 }
 0x2f6   :  { %v740_v54 = vpop.f32.mrf.mxu0  ;;  %v811_v50 = vpop.f32.mrf.mxu1 }
 0x2f7   :  { %v741_v49 = vadd.f32 %v740_v54, %v666_v1  ;;  %v812_v7 = vadd.f32 %v811_v50, %v668_v2 }
 0x2f8   :  { %v742_v53 = vpop.f32.mrf.mxu0  ;;  %v813_v4 = vpop.f32.mrf.mxu1 }
 0x2f9   :  { %v1924_v63 = vmul.f32 -1.442695, %v741_v49  ;;  %v743_v55 = vadd.f32 %v742_v53, %v667_v59  ;;  %v814_v3 = vadd.f32 %v813_v4, %v669_v0 }
 0x2fb   :  { %2087 = vpow2.f32 %v1924_v63  ;;  %v1925_v5 = vmul.f32 -1.442695, %v743_v55  ;;  %v1926_v58 = vmul.f32 -1.442695, %v814_v3 }
 0x2fd   :  { %2089 = vpow2.f32 %v1925_v5 }
 0x2fe   :  { %2091 = vtanh.f32 %v812_v7 }
 0x2ff   :  { %2093 = vpow2.f32 %v1926_v58 }
 0x308   :  { %v2088_v52 = vpop.eup %2087 }
 0x309   :  { %v819_v6 = vadd.f32 1.0, %v2088_v52 }
 0x30a   :  { %v2090_v54 = vpop.eup %2089 }
 0x30b   :  { %2095 = vrcp.f32 %v819_v6  ;;  %v825_v1 = vadd.f32 1.0, %v2090_v54  ;;  %v2092_v53 = vpop.eup %2091 }
 0x30c   :  { %v2094_v49 = vpop.eup %2093 }
 0x30d   :  { %2097 = vrcp.f32 %v825_v1  ;;  %v832_v63 = vadd.f32 1.0, %v2094_v49  ;;  %v2913_v49 = vld [vmem:[#allocation2 + $0x1f0] sm:$0xff] }
 0x30f   :  { %2099 = vrcp.f32 %v832_v63  ;;  %v2925_v63 = vld [vmem:[#allocation2 + $0x1d0] sm:$0xff] }
 0x318   :  { %v2096_v55 = vpop.eup %2095 }
 0x319   :  { %v836_v5 = vmul.f32 %v2096_v55, %v2092_v53  ;;  %v2910_v53 = vld [vmem:[#allocation2 + $0x1e0] sm:$0xff]  ;;  %v2916_v55 = vld [vmem:[#allocation2 + $0x1c8] sm:$0xff] }
 0x31a   :  { %v2098_v59 = vpop.eup %2097 }
 0x31b   :  { %v835_v0 = vmul.f32 %v2098_v59, %v2755_v60  ;;  %v2922_v59 = vld [vmem:[#allocation2 + $0x1c0] sm:$0xff] }
 0x31c   :  { %v2100_v3 = vpop.eup %2099 }
 0x31d   :  { %v2829_v4 = vadd.f32 %v836_v5, %v835_v0  ;;  %v2919_v5 = vld [vmem:[#allocation2 + $0x1d8] sm:$0xff]  ;;  %v2928_v0 = vld [vmem:[#allocation2 + $0x1a8] sm:$0xff] }
 0x31f   :  { %2101 = vtanh.f32 %v2829_v4 }
 0x32c   :  { %v2102_v50 = vpop.eup %2101 }
 0x32d   :  { %v839_v52 = vmul.f32 %v2102_v50, %v2100_v3  ;;  %v2934_v3 = vld [vmem:[#allocation2 + $0x1a0] sm:$0xff]  ;;  %v2937_v50 = vld [vmem:[#allocation2 + $0x1b0] sm:$0xff] }
 0x32f   :  { %913 = vmatmul.mubr.f32.vlgmr.msra.gmra.mxu0 %v839_v52  ;;  %984 = vmatmul.mubr.f32.vlgmr.msra.gmra.mxu1 %v839_v52  ;;  %v2940_v52 = vld [vmem:[#allocation2 + $0x188] sm:$0xff] }
 0x330   :  { %1015 = vmatpush1.msra.mxu0 %v2392_v8  ;;  %1086 = vmatpush1.msra.mxu1 %v2394_v9  ;;  %v3586_v8 = vld [vmem:[#allocation16_spill] sm:$0xff]  ;;  %v3587_v9 = vld [vmem:[#allocation17_spill] sm:$0xff] }
 0x331   :  { %1016 = vmatprep.subr.mxu0 %v2398_v10  ;;  %1087 = vmatprep.subr.mxu1 %v2400_v11  ;;  %v3588_v10 = vld [vmem:[#allocation18_spill] sm:$0xff]  ;;  %v3589_v11 = vld [vmem:[#allocation19_spill] sm:$0xff] }
 0x332   :  { %1017 = vmatpush1.msra.mxu0 %v2404_v12  ;;  %1088 = vmatpush1.msra.mxu1 %v2406_v13  ;;  %v3590_v12 = vld [vmem:[#allocation20_spill] sm:$0xff]  ;;  %v3591_v13 = vld [vmem:[#allocation21_spill] sm:$0xff] }
 0x333   :  { %1018 = vmatprep.subr.mxu0 %v2410_v14  ;;  %1089 = vmatprep.subr.mxu1 %v2412_v15  ;;  %v3592_v14 = vld [vmem:[#allocation22_spill] sm:$0xff]  ;;  %v3593_v15 = vld [vmem:[#allocation23_spill] sm:$0xff] }
 0x334   :  { %1019 = vmatpush1.msra.mxu0 %v2416_v16  ;;  %1090 = vmatpush1.msra.mxu1 %v2418_v17  ;;  %v3594_v16 = vld [vmem:[#allocation24_spill] sm:$0xff]  ;;  %v3595_v17 = vld [vmem:[#allocation25_spill] sm:$0xff] }
 0x335   :  { %1020 = vmatprep.subr.mxu0 %v2422_v18  ;;  %1091 = vmatprep.subr.mxu1 %v2424_v19  ;;  %v3596_v18 = vld [vmem:[#allocation26_spill] sm:$0xff]  ;;  %v3597_v19 = vld [vmem:[#allocation27_spill] sm:$0xff] }
 0x336   :  { %1021 = vmatpush1.msra.mxu0 %v2428_v20  ;;  %1092 = vmatpush1.msra.mxu1 %v2430_v21  ;;  %v3598_v20 = vld [vmem:[#allocation28_spill] sm:$0xff]  ;;  %v3599_v21 = vld [vmem:[#allocation29_spill] sm:$0xff] }
 0x337   :  { %1022 = vmatprep.subr.mxu0 %v2434_v22  ;;  %1093 = vmatprep.subr.mxu1 %v2436_v23  ;;  %v3600_v22 = vld [vmem:[#allocation30_spill] sm:$0xff]  ;;  %v3601_v23 = vld [vmem:[#allocation31_spill] sm:$0xff] }
 0x338   :  { %1023 = vmatpush1.msra.mxu0 %v2440_v24  ;;  %1094 = vmatpush1.msra.mxu1 %v2442_v25  ;;  %v3602_v24 = vld [vmem:[#allocation32_spill] sm:$0xff]  ;;  %v3603_v25 = vld [vmem:[#allocation33_spill] sm:$0xff] }
 0x339   :  { %1024 = vmatprep.subr.mxu0 %v2446_v26  ;;  %1095 = vmatprep.subr.mxu1 %v2448_v27  ;;  %v3604_v26 = vmov 0.0   ;;  %v3605_v27 = vld [vmem:[#allocation34_spill] sm:$0xff] }
 0x33a   :  { %1025 = vmatpush1.msra.mxu0 %v2452_v28  ;;  %1096 = vmatpush1.msra.mxu1 %v2454_v29  ;;  %v2896_v28 = vld [vmem:[#allocation2 + $0x1e8] sm:$0xff]  ;;  %v2899_v29 = vld [vmem:[#allocation2 + $0x1f8] sm:$0xff] }
 0x33b   :  { %1026 = vmatprep.subr.mxu0 %v2458_v30  ;;  %1097 = vmatprep.subr.mxu1 %v2460_v31  ;;  %3606 = vst [vmem:[#allocation13_spill] sm:$0xff] %v2896_v28  ;;  %3607 = vst [vmem:[#allocation14_spill] sm:$0xff] %v2899_v29  ;;  %v3608_v30 = vld [vmem:[#allocation39_spill] sm:$0xff] }
 0x33c   :  { %1027 = vmatpush1.msra.mxu0 %v2464_v32  ;;  %1098 = vmatpush1.msra.mxu1 %v2466_v33  ;;  %v840_v31 = vrot.slane %v3608_v30, 6  ;;  %v3000_v30 = vld [vmem:[#allocation2 + $0xe8] sm:$0xff] }
 0x33d   :  { %1028 = vmatprep.subr.mxu0 %v2470_v34  ;;  %1099 = vmatprep.subr.mxu1 %v2472_v35  ;;  %v841_v34 = vrot.slane %v2671_v48, 6 }
 0x33e   :  { %1029 = vmatpush1.msra.mxu0 %v2476_v36  ;;  %1100 = vmatpush1.msra.mxu1 %v2478_v37 }
 0x33f   :  { %1030 = vmatprep.subr.mxu0 %v2482_v38  ;;  %1101 = vmatprep.subr.mxu1 %v2484_v39 }
 0x340   :  { %1031 = vmatpush1.msra.mxu0 %v2488_v40  ;;  %1102 = vmatpush1.msra.mxu1 %v2490_v41  ;;  %v843_v41 = vrot.slane %v2675_v56, 6 }
 0x341   :  { %1032 = vmatprep.subr.mxu0 %v2494_v42  ;;  %1103 = vmatprep.subr.mxu1 %v2496_v43  ;;  %v842_v43 = vrot.slane %v2678_v51, 6 }
 0x342   :  { %1033 = vmatpush1.msra.mxu0 %v2500_v44  ;;  %1104 = vmatpush1.msra.mxu1 %v2502_v45 }
 0x343   :  { %1034 = vmatprep.subr.mxu0 %v2506_v46  ;;  %1105 = vmatprep.subr.mxu1 %v2508_v47 }
 0x344   :  { %1035 = vmatpush1.msra.mxu0 %v3538_v62  ;;  %1106 = vmatpush1.msra.mxu1 %v3539_v57 }
 0x345   :  { %1036 = vmatprep.subr.mxu0 %v3540_v61  ;;  %1107 = vmatprep.subr.mxu1 %v3586_v8  ;;  %v2943_v8 = vld [vmem:[#allocation2 + $0x198] sm:$0xff] }
 0x346   :  { %1037 = vmatpush1.msra.mxu0 %v3587_v9  ;;  %1108 = vmatpush1.msra.mxu1 %v3588_v10  ;;  %v2946_v9 = vld [vmem:[#allocation2 + $0x180] sm:$0xff]  ;;  %v2949_v10 = vld [vmem:[#allocation2 + $0x190] sm:$0xff] }
 0x347   :  { %1038 = vmatprep.subr.mxu0 %v3589_v11  ;;  %1109 = vmatprep.subr.mxu1 %v3590_v12  ;;  %v2952_v11 = vld [vmem:[#allocation2 + $0x168] sm:$0xff]  ;;  %v2955_v12 = vld [vmem:[#allocation2 + $0x178] sm:$0xff] }
 0x348   :  { %1039 = vmatpush1.msra.mxu0 %v3591_v13  ;;  %1110 = vmatpush1.msra.mxu1 %v3592_v14  ;;  %v2958_v13 = vld [vmem:[#allocation2 + $0x160] sm:$0xff]  ;;  %v2961_v14 = vld [vmem:[#allocation2 + $0x170] sm:$0xff] }
 0x349   :  { %1040 = vmatprep.subr.mxu0 %v3593_v15  ;;  %1111 = vmatprep.subr.mxu1 %v3594_v16  ;;  %v2964_v15 = vld [vmem:[#allocation2 + $0x148] sm:$0xff]  ;;  %v2967_v16 = vld [vmem:[#allocation2 + $0x158] sm:$0xff] }
 0x34a   :  { %1041 = vmatpush1.msra.mxu0 %v3595_v17  ;;  %1112 = vmatpush1.msra.mxu1 %v3596_v18  ;;  %v2970_v17 = vld [vmem:[#allocation2 + $0x140] sm:$0xff]  ;;  %v2973_v18 = vld [vmem:[#allocation2 + $0x150] sm:$0xff] }
 0x34b   :  { %1042 = vmatprep.subr.mxu0 %v3597_v19  ;;  %1113 = vmatprep.subr.mxu1 %v3598_v20  ;;  %v2976_v19 = vld [vmem:[#allocation2 + $0x128] sm:$0xff]  ;;  %v2979_v20 = vld [vmem:[#allocation2 + $0x138] sm:$0xff] }
 0x34c   :  { %1043 = vmatpush1.msra.mxu0 %v3599_v21  ;;  %1114 = vmatpush1.msra.mxu1 %v3600_v22  ;;  %v2982_v21 = vld [vmem:[#allocation2 + $0x120] sm:$0xff]  ;;  %v2985_v22 = vld [vmem:[#allocation2 + $0x130] sm:$0xff] }
 0x34d   :  { %1044 = vmatprep.subr.mxu0 %v3601_v23  ;;  %1115 = vmatprep.subr.mxu1 %v3602_v24  ;;  %v2988_v23 = vld [vmem:[#allocation2 + $0x108] sm:$0xff]  ;;  %v2991_v24 = vld [vmem:[#allocation2 + $0x118] sm:$0xff] }
 0x34e   :  { %1045 = vmatpush1.msra.mxu0 %v3603_v25  ;;  %1078 = vmatprep.mubr.f32.mxu0 %v3604_v26  ;;  %v2994_v25 = vld [vmem:[#allocation2 + $0x100] sm:$0xff] }
 0x34f   :  { %1116 = vmatpush1.msra.mxu1 %v3605_v27  ;;  %1149 = vmatprep.mubr.f32.mxu1 %v3604_v26  ;;  %v2997_v27 = vld [vmem:[#allocation2 + $0x110] sm:$0xff] }
 0x350   :  { %1192 = vmatprep.subr.mxu0 %v2896_v28  ;;  %1263 = vmatprep.subr.mxu1 %v2899_v29 }
 0x3ef   :  { %v914_v32 = vpop.f32.mrf.mxu0  ;;  %v985_v38 = vpop.f32.mrf.mxu1 }
 0x3f0   :  { %v915_v33 = vadd.f32 %v914_v32, %v840_v31  ;;  %v986_v44 = vadd.f32 %v985_v38, %v842_v43  ;;  %v3003_v31 = vld [vmem:[#allocation2 + $0xf8] sm:$0xff]  ;;  %v3006_v32 = vld [vmem:[#allocation2 + $0xe0] sm:$0xff]  ;;  %v3024_v38 = vld [vmem:[#allocation2 + $0xa8] sm:$0xff] }
 0x3f1   :  { %v916_v35 = vpop.f32.mrf.mxu0  ;;  %v987_v40 = vpop.f32.mrf.mxu1  ;;  %v3039_v43 = vld [vmem:[#allocation2 + $0x98] sm:$0xff] }
 0x3f2   :  { %v1927_v36 = vmul.f32 -1.442695, %v915_v33  ;;  %v917_v37 = vadd.f32 %v916_v35, %v841_v34  ;;  %v988_v42 = vadd.f32 %v987_v40, %v843_v41  ;;  %v3009_v33 = vld [vmem:[#allocation2 + $0xf0] sm:$0xff]  ;;  %v3012_v34 = vld [vmem:[#allocation2 + $0xc8] sm:$0xff]  ;;  %v3015_v35 = vld [vmem:[#allocation2 + $0xd8] sm:$0xff]  ;;  %3609 = vst [vmem:[#allocation15_spill] sm:$0xff] %v3039_v43 }
 0x3f3   :  { %v3030_v40 = vld [vmem:[#allocation2 + $0xa0] sm:$0xff]  ;;  %v3033_v41 = vld [vmem:[#allocation2 + $0xb0] sm:$0xff] }
 0x3f4   :  { %2103 = vpow2.f32 %v1927_v36  ;;  %v1928_v39 = vmul.f32 -1.442695, %v917_v37  ;;  %v1929_v45 = vmul.f32 -1.442695, %v988_v42  ;;  %v3018_v36 = vld [vmem:[#allocation2 + $0xc0] sm:$0xff]  ;;  %v3021_v37 = vld [vmem:[#allocation2 + $0xd0] sm:$0xff] }
 0x3f5   :  { %v3036_v42 = vld [vmem:[#allocation2 + $0x88] sm:$0xff] }
 0x3f6   :  { %2105 = vpow2.f32 %v1928_v39  ;;  %v3027_v39 = vld [vmem:[#allocation2 + $0xb8] sm:$0xff] }
 0x3f7   :  { %2107 = vtanh.f32 %v986_v44  ;;  %v3042_v44 = vld [vmem:[#allocation2 + $0x80] sm:$0xff] }
 0x3f8   :  { %2109 = vpow2.f32 %v1929_v45  ;;  %3610 = vst [vmem:[#allocation11_spill] sm:$0xff] %v3042_v44  ;;  %v3045_v45 = vld [vmem:[#allocation2 + $0x90] sm:$0xff] }
 0x3f9   :  { %3611 = vst [vmem:[#allocation12_spill] sm:$0xff] %v3045_v45 }
 0x401   :  { %v2104_v46 = vpop.eup %2103 }
 0x402   :  { %v993_v47 = vadd.f32 1.0, %v2104_v46  ;;  %v3048_v46 = vld [vmem:[#allocation2 + $0x68] sm:$0xff] }
 0x403   :  { %v2106_v62 = vpop.eup %2105  ;;  %3612 = vst [vmem:[#allocation16_spill] sm:$0xff] %v3048_v46 }
 0x404   :  { %2111 = vrcp.f32 %v993_v47  ;;  %v999_v48 = vadd.f32 1.0, %v2106_v62  ;;  %v2108_v57 = vpop.eup %2107  ;;  %v3051_v47 = vld [vmem:[#allocation2 + $0x78] sm:$0xff]  ;;  %v3054_v62 = vld [vmem:[#allocation2 + $0x60] sm:$0xff] }
 0x405   :  { %v2110_v61 = vpop.eup %2109  ;;  %3613 = vst [vmem:[#allocation17_spill] sm:$0xff] %v3051_v47  ;;  %3614 = vst [vmem:[#allocation18_spill] sm:$0xff] %v3054_v62 }
 0x406   :  { %2113 = vrcp.f32 %v999_v48  ;;  %v1006_v2 = vadd.f32 1.0, %v2110_v61  ;;  %v3057_v48 = vld [vmem:[#allocation2 + $0x70] sm:$0xff]  ;;  %v3063_v61 = vld [vmem:[#allocation2 + $0x58] sm:$0xff] }
 0x407   :  { %3615 = vst [vmem:[#allocation19_spill] sm:$0xff] %v3057_v48  ;;  %3617 = vst [vmem:[#allocation21_spill] sm:$0xff] %v3063_v61 }
 0x408   :  { %2115 = vrcp.f32 %v1006_v2  ;;  %v3075_v2 = vld [vmem:[#allocation2 + $0x38] sm:$0xff] }
 0x409   :  { %3621 = vst [vmem:[#allocation25_spill] sm:$0xff] %v3075_v2 }
 0x411   :  { %v2112_v60 = vpop.eup %2111 }
 0x412   :  { %v1010_v6 = vmul.f32 %v2112_v60, %v2108_v57  ;;  %v3060_v57 = vld [vmem:[#allocation2 + $0x48] sm:$0xff]  ;;  %v3066_v60 = vld [vmem:[#allocation2 + $0x40] sm:$0xff] }
 0x413   :  { %v2114_v58 = vpop.eup %2113  ;;  %3616 = vst [vmem:[#allocation20_spill] sm:$0xff] %v3060_v57  ;;  %3618 = vst [vmem:[#allocation22_spill] sm:$0xff] %v3066_v60 }
 0x414   :  { %v1009_v56 = vmul.f32 %v2114_v58, %v2829_v4  ;;  %v2931_v4 = vld [vmem:[#allocation2 + $0x1b8] sm:$0xff]  ;;  %v3072_v58 = vld [vmem:[#allocation2 + $0x28] sm:$0xff] }
 0x415   :  { %v2116_v51 = vpop.eup %2115  ;;  %3620 = vst [vmem:[#allocation24_spill] sm:$0xff] %v3072_v58 }
 0x416   :  { %v2907_v7 = vadd.f32 %v1010_v6, %v1009_v56  ;;  %v3069_v6 = vld [vmem:[#allocation2 + $0x50] sm:$0xff]  ;;  %v3078_v56 = vld [vmem:[#allocation2 + $0x20] sm:$0xff] }
 0x417   :  { %3619 = vst [vmem:[#allocation23_spill] sm:$0xff] %v3069_v6  ;;  %3622 = vst [vmem:[#allocation26_spill] sm:$0xff] %v3078_v56 }
 0x418   :  { %2117 = vtanh.f32 %v2907_v7 }
 0x425   :  { %v2118_v54 = vpop.eup %2117 }
 0x426   :  { %v1013_v1 = vmul.f32 %v2118_v54, %v2116_v51  ;;  %v3081_v51 = vld [vmem:[#allocation2 + $0x30] sm:$0xff]  ;;  %v3084_v54 = vld [vmem:[#allocation2 + $0x8] sm:$0xff] }
 0x427   :  { %3623 = vst [vmem:[#allocation27_spill] sm:$0xff] %v3081_v51  ;;  %3624 = vst [vmem:[#allocation28_spill] sm:$0xff] %v3084_v54 }
 0x428   :  { %1079 = vmatmul.mubr.f32.vlgmr.msra.gmra.mxu0 %v1013_v1  ;;  %1150 = vmatmul.mubr.f32.vlgmr.msra.gmra.mxu1 %v1013_v1  ;;  %v3087_v1 = vld [vmem:[#allocation2 + $0x18] sm:$0xff] }
 0x429   :  { %1193 = vmatpush1.msra.mxu0 %v2910_v53  ;;  %1264 = vmatpush1.msra.mxu1 %v2913_v49  ;;  %3625 = vst [vmem:[#allocation29_spill] sm:$0xff] %v3087_v1 }
 0x42a   :  { %1194 = vmatprep.subr.mxu0 %v2916_v55  ;;  %1265 = vmatprep.subr.mxu1 %v2919_v5 }
 0x42b   :  { %1195 = vmatpush1.msra.mxu0 %v2922_v59  ;;  %1266 = vmatpush1.msra.mxu1 %v2925_v63 }
 0x42c   :  { %1196 = vmatprep.subr.mxu0 %v2928_v0  ;;  %1267 = vmatprep.subr.mxu1 %v2931_v4 }
 0x42d   :  { %1197 = vmatpush1.msra.mxu0 %v2934_v3  ;;  %1268 = vmatpush1.msra.mxu1 %v2937_v50 }
 0x42e   :  { %1198 = vmatprep.subr.mxu0 %v2940_v52  ;;  %1269 = vmatprep.subr.mxu1 %v2943_v8 }
 0x42f   :  { %1199 = vmatpush1.msra.mxu0 %v2946_v9  ;;  %1270 = vmatpush1.msra.mxu1 %v2949_v10 }
 0x430   :  { %1200 = vmatprep.subr.mxu0 %v2952_v11  ;;  %1271 = vmatprep.subr.mxu1 %v2955_v12 }
 0x431   :  { %1201 = vmatpush1.msra.mxu0 %v2958_v13  ;;  %1272 = vmatpush1.msra.mxu1 %v2961_v14 }
 0x432   :  { %1202 = vmatprep.subr.mxu0 %v2964_v15  ;;  %1273 = vmatprep.subr.mxu1 %v2967_v16 }
 0x433   :  { %1203 = vmatpush1.msra.mxu0 %v2970_v17  ;;  %1274 = vmatpush1.msra.mxu1 %v2973_v18 }
 0x434   :  { %1204 = vmatprep.subr.mxu0 %v2976_v19  ;;  %1275 = vmatprep.subr.mxu1 %v2979_v20 }
 0x435   :  { %1205 = vmatpush1.msra.mxu0 %v2982_v21  ;;  %1276 = vmatpush1.msra.mxu1 %v2985_v22 }
 0x436   :  { %1206 = vmatprep.subr.mxu0 %v2988_v23  ;;  %1277 = vmatprep.subr.mxu1 %v2991_v24 }
 0x437   :  { %1207 = vmatpush1.msra.mxu0 %v2994_v25  ;;  %1278 = vmatpush1.msra.mxu1 %v2997_v27 }
 0x438   :  { %1208 = vmatprep.subr.mxu0 %v3000_v30  ;;  %1279 = vmatprep.subr.mxu1 %v3003_v31 }
 0x439   :  { %1209 = vmatpush1.msra.mxu0 %v3006_v32  ;;  %1280 = vmatpush1.msra.mxu1 %v3009_v33 }
 0x43a   :  { %1210 = vmatprep.subr.mxu0 %v3012_v34  ;;  %1281 = vmatprep.subr.mxu1 %v3015_v35 }
 0x43b   :  { %1211 = vmatpush1.msra.mxu0 %v3018_v36  ;;  %1282 = vmatpush1.msra.mxu1 %v3021_v37 }
 0x43c   :  { %1212 = vmatprep.subr.mxu0 %v3024_v38  ;;  %1283 = vmatprep.subr.mxu1 %v3027_v39 }
 0x43d   :  { %1213 = vmatpush1.msra.mxu0 %v3030_v40  ;;  %1284 = vmatpush1.msra.mxu1 %v3033_v41 }
 0x43e   :  { %1214 = vmatprep.subr.mxu0 %v3036_v42  ;;  %1285 = vmatprep.subr.mxu1 %v3039_v43 }
 0x43f   :  { %1215 = vmatpush1.msra.mxu0 %v3042_v44  ;;  %1286 = vmatpush1.msra.mxu1 %v3045_v45 }
 0x440   :  { %1216 = vmatprep.subr.mxu0 %v3048_v46  ;;  %1287 = vmatprep.subr.mxu1 %v3051_v47  ;;  %v3631_v46 = vld [vmem:[#allocation37_spill] sm:$0xff] }
 0x441   :  { %1217 = vmatpush1.msra.mxu0 %v3054_v62  ;;  %1288 = vmatpush1.msra.mxu1 %v3057_v48  ;;  %v3630_v62 = vld [vmem:[#allocation38_spill] sm:$0xff] }
 0x442   :  { %1218 = vmatprep.subr.mxu0 %v3060_v57  ;;  %1289 = vmatprep.subr.mxu1 %v3063_v61 }
 0x443   :  { %1219 = vmatpush1.msra.mxu0 %v3066_v60  ;;  %1290 = vmatpush1.msra.mxu1 %v3069_v6  ;;  %v3629_v60 = vld [vmem:[#allocation36_spill] sm:$0xff] }
 0x444   :  { %1220 = vmatprep.subr.mxu0 %v3072_v58  ;;  %1291 = vmatprep.subr.mxu1 %v3075_v2  ;;  %v3090_v58 = vld [vmem:[#allocation2] sm:$0xff]  ;;  %v3094_v2 = vld [vmem:[#allocation2 + $0x10] sm:$0xff] }
 0x445   :  { %1221 = vmatpush1.msra.mxu0 %v3078_v56  ;;  %1292 = vmatpush1.msra.mxu1 %v3081_v51  ;;  %3626 = vst [vmem:[#allocation30_spill] sm:$0xff] %v3090_v58  ;;  %3627 = vst [vmem:[#allocation31_spill] sm:$0xff] %v3094_v2  ;;  %v3628_v51 = vld [vmem:[#allocation35_spill] sm:$0xff] }
 0x446   :  { %1222 = vmatprep.subr.mxu0 %v3084_v54  ;;  %1293 = vmatprep.subr.mxu1 %v3087_v1 }
 0x447   :  { %1223 = vmatpush1.msra.mxu0 %v3090_v58  ;;  %1256 = vmatprep.mubr.f32.mxu0 %v3604_v26 }
 0x448   :  { %1294 = vmatpush1.msra.mxu1 %v3094_v2  ;;  %1327 = vmatprep.mubr.f32.mxu1 %v3604_v26 }
 0x449   :  { %1366 = vmatprep.subr.mxu0 %v2896_v28  ;;  %1437 = vmatprep.subr.mxu1 %v2899_v29 }
 0x4e8   :  { %v1080_v54 = vpop.f32.mrf.mxu0  ;;  %v1151_v58 = vpop.f32.mrf.mxu1 }
 0x4e9   :  { %v1081_v56 = vadd.f32 %v1080_v54, %v3628_v51  ;;  %v1152_v28 = vadd.f32 %v1151_v58, %v3631_v46 }
 0x4ea   :  { %v1082_v1 = vpop.f32.mrf.mxu0  ;;  %v1153_v48 = vpop.f32.mrf.mxu1 }
 0x4eb   :  { %v1930_v6 = vmul.f32 -1.442695, %v1081_v56  ;;  %v1083_v61 = vadd.f32 %v1082_v1, %v3629_v60  ;;  %v1154_v2 = vadd.f32 %v1153_v48, %v3630_v62 }
 0x4ed   :  { %2119 = vpow2.f32 %v1930_v6  ;;  %v1931_v57 = vmul.f32 -1.442695, %v1083_v61  ;;  %v1932_v47 = vmul.f32 -1.442695, %v1154_v2  ;;  %v3637_v2 = vld [vmem:[#allocation20_spill] sm:$0xff] }
 0x4ef   :  { %2121 = vpow2.f32 %v1931_v57 }
 0x4f0   :  { %2123 = vpow2.f32 %v1932_v47 }
 0x4fa   :  { %v2120_v26 = vpop.eup %2119 }
 0x4fb   :  { %v1159_v45 = vadd.f32 1.0, %v2120_v26 }
 0x4fc   :  { %v2122_v29 = vpop.eup %2121 }
 0x4fd   :  { %2125 = vrcp.f32 %v1159_v45  ;;  %v1165_v54 = vadd.f32 1.0, %v2122_v29  ;;  %v2124_v56 = vpop.eup %2123  ;;  %v3633_v29 = vld [vmem:[#allocation16_spill] sm:$0xff]  ;;  %v3635_v45 = vld [vmem:[#allocation18_spill] sm:$0xff] }
 0x4fe   :  { %2127 = vtanh.f32 %v1152_v28  ;;  %v1172_v61 = vadd.f32 1.0, %v2124_v56  ;;  %v3632_v28 = vld [vmem:[#allocation12_spill] sm:$0xff]  ;;  %v3640_v56 = vld [vmem:[#allocation23_spill] sm:$0xff] }
 0x4ff   :  { %2129 = vrcp.f32 %v1165_v54  ;;  %v3639_v54 = vld [vmem:[#allocation22_spill] sm:$0xff] }
 0x500   :  { %2131 = vrcp.f32 %v1172_v61  ;;  %v3643_v61 = vld [vmem:[#allocation26_spill] sm:$0xff] }
 0x50a   :  { %v2126_v1 = vpop.eup %2125 }
 0x50b   :  { %v2128_v6 = vpop.eup %2127 }
 0x50c   :  { %v2130_v60 = vpop.eup %2129  ;;  %v1176_v57 = vmul.f32 %v2128_v6, %v2126_v1  ;;  %v3641_v1 = vld [vmem:[#allocation24_spill] sm:$0xff]  ;;  %v3642_v6 = vld [vmem:[#allocation25_spill] sm:$0xff] }
 0x50d   :  { %v1175_v51 = vmul.f32 %v2130_v60, %v2907_v7  ;;  %v2132_v26 = vpop.eup %2131  ;;  %v3634_v7 = vld [vmem:[#allocation17_spill] sm:$0xff]  ;;  %v3636_v60 = vld [vmem:[#allocation19_spill] sm:$0xff] }
 0x50f   :  { %v3105_v48 = vadd.f32 %v1176_v57, %v1175_v51  ;;  %v3638_v51 = vld [vmem:[#allocation21_spill] sm:$0xff]  ;;  %v3644_v57 = vld [vmem:[#allocation27_spill] sm:$0xff] }
 0x511   :  { %2133 = vtanh.f32 %v3105_v48 }
 0x51e   :  { %v2134_v58 = vpop.eup %2133 }
 0x51f   :  { %v1179_v47 = vmul.f32 %v2134_v58, %v2132_v26  ;;  %v3645_v26 = vld [vmem:[#allocation28_spill] sm:$0xff]  ;;  %v3646_v58 = vld [vmem:[#allocation29_spill] sm:$0xff] }
 0x521   :  { %1257 = vmatmul.mubr.f32.vlgmr.msra.gmra.mxu0 %v1179_v47  ;;  %1328 = vmatmul.mubr.f32.vlgmr.msra.gmra.mxu1 %v1179_v47  ;;  %v3647_v47 = vld [vmem:[#allocation30_spill] sm:$0xff] }
 0x522   :  { %1367 = vmatpush1.msra.mxu0 %v2910_v53  ;;  %1438 = vmatpush1.msra.mxu1 %v2913_v49 }
 0x523   :  { %1368 = vmatprep.subr.mxu0 %v2916_v55  ;;  %1439 = vmatprep.subr.mxu1 %v2919_v5 }
 0x524   :  { %1369 = vmatpush1.msra.mxu0 %v2922_v59  ;;  %1440 = vmatpush1.msra.mxu1 %v2925_v63 }
 0x525   :  { %1370 = vmatprep.subr.mxu0 %v2928_v0  ;;  %1441 = vmatprep.subr.mxu1 %v2931_v4 }
 0x526   :  { %1371 = vmatpush1.msra.mxu0 %v2934_v3  ;;  %1442 = vmatpush1.msra.mxu1 %v2937_v50 }
 0x527   :  { %1372 = vmatprep.subr.mxu0 %v2940_v52  ;;  %1443 = vmatprep.subr.mxu1 %v2943_v8 }
 0x528   :  { %1373 = vmatpush1.msra.mxu0 %v2946_v9  ;;  %1444 = vmatpush1.msra.mxu1 %v2949_v10 }
 0x529   :  { %1374 = vmatprep.subr.mxu0 %v2952_v11  ;;  %1445 = vmatprep.subr.mxu1 %v2955_v12 }
 0x52a   :  { %1375 = vmatpush1.msra.mxu0 %v2958_v13  ;;  %1446 = vmatpush1.msra.mxu1 %v2961_v14 }
 0x52b   :  { %1376 = vmatprep.subr.mxu0 %v2964_v15  ;;  %1447 = vmatprep.subr.mxu1 %v2967_v16 }
 0x52c   :  { %1377 = vmatpush1.msra.mxu0 %v2970_v17  ;;  %1448 = vmatpush1.msra.mxu1 %v2973_v18 }
 0x52d   :  { %1378 = vmatprep.subr.mxu0 %v2976_v19  ;;  %1449 = vmatprep.subr.mxu1 %v2979_v20 }
 0x52e   :  { %1379 = vmatpush1.msra.mxu0 %v2982_v21  ;;  %1450 = vmatpush1.msra.mxu1 %v2985_v22 }
 0x52f   :  { %1380 = vmatprep.subr.mxu0 %v2988_v23  ;;  %1451 = vmatprep.subr.mxu1 %v2991_v24 }
 0x530   :  { %1381 = vmatpush1.msra.mxu0 %v2994_v25  ;;  %1452 = vmatpush1.msra.mxu1 %v2997_v27 }
 0x531   :  { %1382 = vmatprep.subr.mxu0 %v3000_v30  ;;  %1453 = vmatprep.subr.mxu1 %v3003_v31 }
 0x532   :  { %1383 = vmatpush1.msra.mxu0 %v3006_v32  ;;  %1454 = vmatpush1.msra.mxu1 %v3009_v33 }
 0x533   :  { %1384 = vmatprep.subr.mxu0 %v3012_v34  ;;  %1455 = vmatprep.subr.mxu1 %v3015_v35 }
 0x534   :  { %1385 = vmatpush1.msra.mxu0 %v3018_v36  ;;  %1456 = vmatpush1.msra.mxu1 %v3021_v37 }
 0x535   :  { %1386 = vmatprep.subr.mxu0 %v3024_v38  ;;  %1457 = vmatprep.subr.mxu1 %v3027_v39 }
 0x536   :  { %1387 = vmatpush1.msra.mxu0 %v3030_v40  ;;  %1458 = vmatpush1.msra.mxu1 %v3033_v41 }
 0x537   :  { %1388 = vmatprep.subr.mxu0 %v3036_v42  ;;  %1459 = vmatprep.subr.mxu1 %v3039_v43 }
 0x538   :  { %1389 = vmatpush1.msra.mxu0 %v3042_v44  ;;  %1460 = vmatpush1.msra.mxu1 %v3632_v28 }
 0x539   :  { %1390 = vmatprep.subr.mxu0 %v3633_v29  ;;  %1461 = vmatprep.subr.mxu1 %v3634_v7 }
 0x53a   :  { %1391 = vmatpush1.msra.mxu0 %v3635_v45  ;;  %1462 = vmatpush1.msra.mxu1 %v3636_v60  ;;  %v3653_v60 = vld [vmem:[#allocation36_spill] sm:$0xff] }
 0x53b   :  { %1392 = vmatprep.subr.mxu0 %v3637_v2  ;;  %1463 = vmatprep.subr.mxu1 %v3638_v51  ;;  %v3648_v2 = vmov 0.0   ;;  %v3649_v51 = vld [vmem:[#allocation31_spill] sm:$0xff] }
 0x53c   :  { %1393 = vmatpush1.msra.mxu0 %v3639_v54  ;;  %1464 = vmatpush1.msra.mxu1 %v3640_v56  ;;  %v3650_v56 = vld [vmem:[#allocation13_spill] sm:$0xff] }
 0x53d   :  { %1394 = vmatprep.subr.mxu0 %v3641_v1  ;;  %1465 = vmatprep.subr.mxu1 %v3642_v6  ;;  %v3651_v1 = vld [vmem:[#allocation14_spill] sm:$0xff]  ;;  %v3652_v6 = vld [vmem:[#allocation35_spill] sm:$0xff] }
 0x53e   :  { %1395 = vmatpush1.msra.mxu0 %v3643_v61  ;;  %1466 = vmatpush1.msra.mxu1 %v3644_v57  ;;  %v1184_v61 = vrot.slane %v3652_v6, 2 }
 0x53f   :  { %1396 = vmatprep.subr.mxu0 %v3645_v26  ;;  %1467 = vmatprep.subr.mxu1 %v3646_v58  ;;  %v1185_v26 = vrot.slane %v3653_v60, 2 }
 0x540   :  { %1397 = vmatpush1.msra.mxu0 %v3647_v47  ;;  %1430 = vmatprep.mubr.f32.mxu0 %v3648_v2 }
 0x541   :  { %1468 = vmatpush1.msra.mxu1 %v3649_v51  ;;  %1501 = vmatprep.mubr.f32.mxu1 %v3648_v2  ;;  %v1187_v2 = vrot.slane %v3630_v62, 2 }
 0x542   :  { %1540 = vmatprep.subr.mxu0 %v3650_v56  ;;  %1611 = vmatprep.subr.mxu1 %v3651_v1  ;;  %v1186_v56 = vrot.slane %v3631_v46, 2 }
 0x5e1   :  { %v1258_v54 = vpop.f32.mrf.mxu0  ;;  %v1329_v47 = vpop.f32.mrf.mxu1 }
 0x5e2   :  { %v1259_v57 = vadd.f32 %v1258_v54, %v1184_v61  ;;  %v1330_v6 = vadd.f32 %v1329_v47, %v1186_v56 }
 0x5e3   :  { %v1260_v45 = vpop.f32.mrf.mxu0  ;;  %v1331_v51 = vpop.f32.mrf.mxu1 }
 0x5e4   :  { %v1933_v58 = vmul.f32 -1.442695, %v1259_v57  ;;  %v1261_v7 = vadd.f32 %v1260_v45, %v1185_v26  ;;  %v1332_v28 = vadd.f32 %v1331_v51, %v1187_v2 }
 0x5e6   :  { %2135 = vpow2.f32 %v1933_v58  ;;  %v1934_v29 = vmul.f32 -1.442695, %v1261_v7  ;;  %v1935_v1 = vmul.f32 -1.442695, %v1332_v28 }
 0x5e8   :  { %2137 = vpow2.f32 %v1934_v29 }
 0x5e9   :  { %2139 = vpow2.f32 %v1935_v1 }
 0x5f3   :  { %v2136_v44 = vpop.eup %2135 }
 0x5f4   :  { %v1337_v43 = vadd.f32 1.0, %v2136_v44 }
 0x5f5   :  { %v2138_v54 = vpop.eup %2137 }
 0x5f6   :  { %2141 = vrcp.f32 %v1337_v43  ;;  %v1343_v61 = vadd.f32 1.0, %v2138_v54  ;;  %v2140_v45 = vpop.eup %2139 }
 0x5f7   :  { %2143 = vtanh.f32 %v1330_v6  ;;  %v1350_v26 = vadd.f32 1.0, %v2140_v45 }
 0x5f8   :  { %2145 = vrcp.f32 %v1343_v61 }
 0x5f9   :  { %2147 = vrcp.f32 %v1350_v26  ;;  %v1718_v26 = vld [vmem:[%s3402_s4 + $0x60] sm:$0xff] }
 0x603   :  { %v2142_v57 = vpop.eup %2141 }
 0x604   :  { %v2144_v7 = vpop.eup %2143 }
 0x605   :  { %v2146_v29 = vpop.eup %2145  ;;  %v1354_v58 = vmul.f32 %v2144_v7, %v2142_v57  ;;  %v1721_v57 = vld [vmem:[%s3402_s4 + $0x78] sm:$0xff]  ;;  %v1720_v7 = vld [vmem:[%s3402_s4 + $0x70] sm:$0xff] }
 0x606   :  { %v1353_v2 = vmul.f32 %v2146_v29, %v3105_v48  ;;  %v2148_v44 = vpop.eup %2147  ;;  %v1719_v29 = vld [vmem:[%s3402_s4 + $0x68] sm:$0xff] }
 0x608   :  { %v3179_v51 = vadd.f32 %v1354_v58, %v1353_v2  ;;  %v1717_v58 = vld [vmem:[%s3402_s4 + $0x58] sm:$0xff]  ;;  %v1716_v2 = vld [vmem:[%s3402_s4 + $0x50] sm:$0xff] }
 0x60a   :  { %2149 = vtanh.f32 %v3179_v51 }
 0x617   :  { %v2150_v28 = vpop.eup %2149 }
 0x618   :  { %v1357_v47 = vmul.f32 %v2150_v28, %v2148_v44  ;;  %v1714_v44 = vld [vmem:[%s3402_s4 + $0x40] sm:$0xff]  ;;  %v1713_v28 = vld [vmem:[%s3402_s4 + $0x38] sm:$0xff] }
 0x61a   :  { %1431 = vmatmul.mubr.f32.vlgmr.msra.gmra.mxu0 %v1357_v47  ;;  %1502 = vmatmul.mubr.f32.vlgmr.msra.gmra.mxu1 %v1357_v47  ;;  %v1712_v47 = vld [vmem:[%s3402_s4 + $0x30] sm:$0xff] }
 0x61b   :  { %1541 = vmatpush1.msra.mxu0 %v2910_v53  ;;  %1612 = vmatpush1.msra.mxu1 %v2913_v49  ;;  %v3654_v53 = vld [vmem:[#allocation15_spill] sm:$0xff] }
 0x61c   :  { %1542 = vmatprep.subr.mxu0 %v2916_v55  ;;  %1613 = vmatprep.subr.mxu1 %v2919_v5  ;;  %v3655_v49 = vld [vmem:[#allocation11_spill] sm:$0xff]  ;;  %v3656_v55 = vld [vmem:[#allocation12_spill] sm:$0xff] }
 0x61d   :  { %1543 = vmatpush1.msra.mxu0 %v2922_v59  ;;  %1614 = vmatpush1.msra.mxu1 %v2925_v63  ;;  %v3657_v5 = vld [vmem:[#allocation16_spill] sm:$0xff]  ;;  %v3658_v59 = vld [vmem:[#allocation17_spill] sm:$0xff]  ;;  %v3659_v63 = vld [vmem:[#allocation18_spill] sm:$0xff] }
 0x61e   :  { %1544 = vmatprep.subr.mxu0 %v2928_v0  ;;  %1615 = vmatprep.subr.mxu1 %v2931_v4  ;;  %v3660_v0 = vld [vmem:[#allocation19_spill] sm:$0xff]  ;;  %v3661_v4 = vld [vmem:[#allocation20_spill] sm:$0xff] }
 0x61f   :  { %1545 = vmatpush1.msra.mxu0 %v2934_v3  ;;  %1616 = vmatpush1.msra.mxu1 %v2937_v50  ;;  %v3662_v3 = vld [vmem:[#allocation21_spill] sm:$0xff]  ;;  %v3663_v50 = vld [vmem:[#allocation22_spill] sm:$0xff] }
 0x620   :  { %1546 = vmatprep.subr.mxu0 %v2940_v52  ;;  %1617 = vmatprep.subr.mxu1 %v2943_v8  ;;  %v3664_v52 = vld [vmem:[#allocation23_spill] sm:$0xff]  ;;  %v3665_v8 = vld [vmem:[#allocation24_spill] sm:$0xff] }
 0x621   :  { %1547 = vmatpush1.msra.mxu0 %v2946_v9  ;;  %1618 = vmatpush1.msra.mxu1 %v2949_v10  ;;  %v3666_v9 = vld [vmem:[#allocation25_spill] sm:$0xff]  ;;  %v3667_v10 = vld [vmem:[#allocation26_spill] sm:$0xff] }
 0x622   :  { %1548 = vmatprep.subr.mxu0 %v2952_v11  ;;  %1619 = vmatprep.subr.mxu1 %v2955_v12  ;;  %v3668_v11 = vld [vmem:[#allocation27_spill] sm:$0xff]  ;;  %v3669_v12 = vld [vmem:[#allocation28_spill] sm:$0xff] }
 0x623   :  { %1549 = vmatpush1.msra.mxu0 %v2958_v13  ;;  %1620 = vmatpush1.msra.mxu1 %v2961_v14  ;;  %v3670_v13 = vld [vmem:[#allocation29_spill] sm:$0xff]  ;;  %v3671_v14 = vld [vmem:[#allocation30_spill] sm:$0xff] }
 0x624   :  { %1550 = vmatprep.subr.mxu0 %v2964_v15  ;;  %1621 = vmatprep.subr.mxu1 %v2967_v16  ;;  %v3672_v15 = vmov 0.0   ;;  %v3673_v16 = vld [vmem:[#allocation31_spill] sm:$0xff] }
 0x625   :  { %1551 = vmatpush1.msra.mxu0 %v2970_v17  ;;  %1622 = vmatpush1.msra.mxu1 %v2973_v18  ;;  %v3674_v17 = vld [vmem:[#allocation35_spill] sm:$0xff] }
 0x626   :  { %1552 = vmatprep.subr.mxu0 %v2976_v19  ;;  %1623 = vmatprep.subr.mxu1 %v2979_v20  ;;  %v1358_v18 = vrot.slane %v3674_v17, 4 }
 0x627   :  { %1553 = vmatpush1.msra.mxu0 %v2982_v21  ;;  %1624 = vmatpush1.msra.mxu1 %v2985_v22  ;;  %v1359_v21 = vrot.slane %v3653_v60, 4 }
 0x628   :  { %1554 = vmatprep.subr.mxu0 %v2988_v23  ;;  %1625 = vmatprep.subr.mxu1 %v2991_v24 }
 0x629   :  { %1555 = vmatpush1.msra.mxu0 %v2994_v25  ;;  %1626 = vmatpush1.msra.mxu1 %v2997_v27 }
 0x62a   :  { %1556 = vmatprep.subr.mxu0 %v3000_v30  ;;  %1627 = vmatprep.subr.mxu1 %v3003_v31  ;;  %v1361_v31 = vrot.slane %v3630_v62, 4 }
 0x62b   :  { %1557 = vmatpush1.msra.mxu0 %v3006_v32  ;;  %1628 = vmatpush1.msra.mxu1 %v3009_v33  ;;  %v1360_v33 = vrot.slane %v3631_v46, 4 }
 0x62c   :  { %1558 = vmatprep.subr.mxu0 %v3012_v34  ;;  %1629 = vmatprep.subr.mxu1 %v3015_v35 }
 0x62d   :  { %1559 = vmatpush1.msra.mxu0 %v3018_v36  ;;  %1630 = vmatpush1.msra.mxu1 %v3021_v37 }
 0x62e   :  { %1560 = vmatprep.subr.mxu0 %v3024_v38  ;;  %1631 = vmatprep.subr.mxu1 %v3027_v39 }
 0x62f   :  { %1561 = vmatpush1.msra.mxu0 %v3030_v40  ;;  %1632 = vmatpush1.msra.mxu1 %v3033_v41 }
 0x630   :  { %1562 = vmatprep.subr.mxu0 %v3036_v42  ;;  %1633 = vmatprep.subr.mxu1 %v3654_v53  ;;  %v1711_v53 = vld [vmem:[%s3402_s4 + $0x28] sm:$0xff] }
 0x631   :  { %1563 = vmatpush1.msra.mxu0 %v3655_v49  ;;  %1634 = vmatpush1.msra.mxu1 %v3656_v55  ;;  %v1710_v49 = vld [vmem:[%s3402_s4 + $0x20] sm:$0xff]  ;;  %v1709_v55 = vld [vmem:[%s3402_s4 + $0x18] sm:$0xff] }
 0x632   :  { %1564 = vmatprep.subr.mxu0 %v3657_v5  ;;  %1635 = vmatprep.subr.mxu1 %v3658_v59  ;;  %v1708_v5 = vld [vmem:[%s3402_s4 + $0x10] sm:$0xff]  ;;  %v1707_v59 = vld [vmem:[%s3402_s4 + $0x8] sm:$0xff] }
 0x633   :  { %1565 = vmatpush1.msra.mxu0 %v3659_v63  ;;  %1636 = vmatpush1.msra.mxu1 %v3660_v0  ;;  %v1706_v63 = vld [vmem:[%s3402_s4] sm:$0xff]  ;;  %v1814_v0 = vld [vmem:[%s3404_s6 + $0x78] sm:$0xff] }
 0x634   :  { %1566 = vmatprep.subr.mxu0 %v3661_v4  ;;  %1637 = vmatprep.subr.mxu1 %v3662_v3  ;;  %v1813_v4 = vld [vmem:[%s3404_s6 + $0x70] sm:$0xff]  ;;  %v1812_v3 = vld [vmem:[%s3404_s6 + $0x68] sm:$0xff] }
 0x635   :  { %1567 = vmatpush1.msra.mxu0 %v3663_v50  ;;  %1638 = vmatpush1.msra.mxu1 %v3664_v52  ;;  %v1811_v50 = vld [vmem:[%s3404_s6 + $0x60] sm:$0xff]  ;;  %v1810_v52 = vld [vmem:[%s3404_s6 + $0x58] sm:$0xff] }
 0x636   :  { %1568 = vmatprep.subr.mxu0 %v3665_v8  ;;  %1639 = vmatprep.subr.mxu1 %v3666_v9  ;;  %v1809_v8 = vld [vmem:[%s3404_s6 + $0x50] sm:$0xff]  ;;  %v1808_v9 = vld [vmem:[%s3404_s6 + $0x48] sm:$0xff] }
 0x637   :  { %1569 = vmatpush1.msra.mxu0 %v3667_v10  ;;  %1640 = vmatpush1.msra.mxu1 %v3668_v11  ;;  %v1807_v10 = vld [vmem:[%s3404_s6 + $0x40] sm:$0xff]  ;;  %v1806_v11 = vld [vmem:[%s3404_s6 + $0x38] sm:$0xff] }
 0x638   :  { %1570 = vmatprep.subr.mxu0 %v3669_v12  ;;  %1641 = vmatprep.subr.mxu1 %v3670_v13  ;;  %v1805_v12 = vld [vmem:[%s3404_s6 + $0x30] sm:$0xff]  ;;  %v1804_v13 = vld [vmem:[%s3404_s6 + $0x28] sm:$0xff] }
 0x639   :  { %1571 = vmatpush1.msra.mxu0 %v3671_v14  ;;  %1604 = vmatprep.mubr.f32.mxu0 %v3672_v15  ;;  %v1803_v14 = vld [vmem:[%s3404_s6 + $0x20] sm:$0xff] }
 0x63a   :  { %1642 = vmatpush1.msra.mxu1 %v3673_v16  ;;  %1675 = vmatprep.mubr.f32.mxu1 %v3672_v15  ;;  %v1802_v16 = vld [vmem:[%s3404_s6 + $0x18] sm:$0xff] }
 0x63b   :  { %1978 = vmatprep.subr.mxu0 %v3672_v15  ;;  %2013 = vmatprep.subr.mxu1 %v3672_v15 }
 0x6da   :  { %v1432_v19 = vpop.f32.mrf.mxu0  ;;  %v1503_v25 = vpop.f32.mrf.mxu1 }
 0x6db   :  { %v1433_v20 = vadd.f32 %v1432_v19, %v1358_v18  ;;  %v1504_v36 = vadd.f32 %v1503_v25, %v1360_v33  ;;  %v1801_v18 = vld [vmem:[%s3404_s6 + $0x10] sm:$0xff]  ;;  %v1532_v19 = vrot.slane %v3674_v17, 6 }
 0x6dc   :  { %v1434_v22 = vpop.f32.mrf.mxu0  ;;  %v1505_v30 = vpop.f32.mrf.mxu1 }
 0x6dd   :  { %v1936_v23 = vmul.f32 -1.442695, %v1433_v20  ;;  %v1435_v24 = vadd.f32 %v1434_v22, %v1359_v21  ;;  %v1506_v32 = vadd.f32 %v1505_v30, %v1361_v31  ;;  %v1533_v22 = vrot.slane %v3653_v60, 6 }
 0x6df   :  { %2151 = vpow2.f32 %v1936_v23  ;;  %v1937_v27 = vmul.f32 -1.442695, %v1435_v24  ;;  %v1938_v34 = vmul.f32 -1.442695, %v1506_v32  ;;  %v1535_v32 = vrot.slane %v3630_v62, 6 }
 0x6e1   :  { %2153 = vpow2.f32 %v1937_v27 }
 0x6e2   :  { %2155 = vpow2.f32 %v1938_v34  ;;  %v1534_v34 = vrot.slane %v3631_v46, 6 }
 0x6ec   :  { %v2152_v35 = vpop.eup %2151 }
 0x6ed   :  { %v1511_v37 = vadd.f32 1.0, %v2152_v35 }
 0x6ee   :  { %v2154_v38 = vpop.eup %2153 }
 0x6ef   :  { %2157 = vrcp.f32 %v1511_v37  ;;  %v1517_v39 = vadd.f32 1.0, %v2154_v38  ;;  %v2156_v40 = vpop.eup %2155 }
 0x6f0   :  { %2159 = vtanh.f32 %v1504_v36  ;;  %v1524_v48 = vadd.f32 1.0, %v2156_v40 }
 0x6f1   :  { %2161 = vrcp.f32 %v1517_v39 }
 0x6f2   :  { %2163 = vrcp.f32 %v1524_v48 }
 0x6fc   :  { %v2158_v41 = vpop.eup %2157 }
 0x6fd   :  { %v2160_v42 = vpop.eup %2159 }
 0x6fe   :  { %v2162_v43 = vpop.eup %2161  ;;  %v1528_v6 = vmul.f32 %v2160_v42, %v2158_v41 }
 0x6ff   :  { %v1527_v56 = vmul.f32 %v2162_v43, %v3179_v51  ;;  %v2164_v54 = vpop.eup %2163  ;;  %v1715_v51 = vld [vmem:[%s3402_s4 + $0x48] sm:$0xff] }
 0x701   :  { %v3253_v1 = vadd.f32 %v1528_v6, %v1527_v56 }
 0x703   :  { %2165 = vtanh.f32 %v3253_v1 }
 0x710   :  { %v2166_v61 = vpop.eup %2165 }
 0x711   :  { %v1531_v45 = vmul.f32 %v2166_v61, %v2164_v54  ;;  %v1800_v61 = vld [vmem:[%s3404_s6 + $0x8] sm:$0xff] }
 0x713   :  { %1605 = vmatmul.mubr.f32.vlgmr.msra.gmra.mxu0 %v1531_v45  ;;  %1676 = vmatmul.mubr.f32.vlgmr.msra.gmra.mxu1 %v1531_v45  ;;  %v1799_v45 = vld [vmem:[%s3404_s6] sm:$0xff]  ;;  %s2287_s6 = scalar_lea.vmem %s1901_s17, 32 }
 0x714   :  { %1979 = vmatpush3.msra.mxu0 %v1721_v57  ;;  %2010 = vmatprep.mubr.msk.f32.mxu0 %vm2318_vm2, %v3672_v15  ;;  %p2288_p10 = scmp.ne.s32.totalorder %s1901_s17, %s2287_s6  ;;  %p2293_p12 = scmp.lt.s32.totalorder %s2287_s6, %s2287_s6 }
 0x715   :  { %1980 = vmatprep.subr.mxu0 %v3672_v15  ;;  %2045 = vmatprep.mubr.msk.f32.mxu1 %vm2318_vm2, %v3672_v15 }
 0x716   :  { %1981 = vmatpush3.msra.mxu0 %v1720_v7  ;;  %2014 = vmatpush3.msra.mxu1 %v1814_v0  ;;  %p2294_p13 = por %p2293_p12, %p2292_p11 }
 0x717   :  { %1982 = vmatprep.subr.mxu0 %v3672_v15  ;;  %2015 = vmatprep.subr.mxu1 %v3672_v15 }
 0x718   :  { %1983 = vmatpush3.msra.mxu0 %v1719_v29  ;;  %2016 = vmatpush3.msra.mxu1 %v1813_v4  ;;  %p2295_p0 = pnand %p2294_p13, %p2288_p10 }
 0x719   :  { %1984 = vmatprep.subr.mxu0 %v3672_v15  ;;  %2017 = vmatprep.subr.mxu1 %v3672_v15 }
 0x71a   :  { %1985 = vmatpush3.msra.mxu0 %v1718_v26  ;;  %2018 = vmatpush3.msra.mxu1 %v1812_v3  ;;  %v1943_v26 = vld [vmem:[%s3405_s7] ss:$0 sm:$0xff] }
 0x71b   :  { %1986 = vmatprep.subr.mxu0 %v3672_v15  ;;  %2019 = vmatprep.subr.mxu1 %v3672_v15 }
 0x71c   :  { %1987 = vmatpush3.msra.mxu0 %v1717_v58  ;;  %2020 = vmatpush3.msra.mxu1 %v1811_v50 }
 0x71d   :  { %1988 = vmatprep.subr.mxu0 %v3672_v15  ;;  %2021 = vmatprep.subr.mxu1 %v3672_v15 }
 0x71e   :  { %1989 = vmatpush3.msra.mxu0 %v1716_v2  ;;  %2022 = vmatpush3.msra.mxu1 %v1810_v52 }
 0x71f   :  { %1990 = vmatprep.subr.mxu0 %v3672_v15  ;;  %2023 = vmatprep.subr.mxu1 %v3672_v15 }
 0x720   :  { %1991 = vmatpush3.msra.mxu0 %v1715_v51  ;;  %2024 = vmatpush3.msra.mxu1 %v1809_v8 }
 0x721   :  { %1992 = vmatprep.subr.mxu0 %v3672_v15  ;;  %2025 = vmatprep.subr.mxu1 %v3672_v15 }
 0x722   :  { %1993 = vmatpush3.msra.mxu0 %v1714_v44  ;;  %2026 = vmatpush3.msra.mxu1 %v1808_v9 }
 0x723   :  { %1994 = vmatprep.subr.mxu0 %v3672_v15  ;;  %2027 = vmatprep.subr.mxu1 %v3672_v15 }
 0x724   :  { %1995 = vmatpush3.msra.mxu0 %v1713_v28  ;;  %2028 = vmatpush3.msra.mxu1 %v1807_v10 }
 0x725   :  { %1996 = vmatprep.subr.mxu0 %v3672_v15  ;;  %2029 = vmatprep.subr.mxu1 %v3672_v15 }
 0x726   :  { %1997 = vmatpush3.msra.mxu0 %v1712_v47  ;;  %2030 = vmatpush3.msra.mxu1 %v1806_v11 }
 0x727   :  { %1998 = vmatprep.subr.mxu0 %v3672_v15  ;;  %2031 = vmatprep.subr.mxu1 %v3672_v15 }
 0x728   :  { %1999 = vmatpush3.msra.mxu0 %v1711_v53  ;;  %2032 = vmatpush3.msra.mxu1 %v1805_v12 }
 0x729   :  { %2000 = vmatprep.subr.mxu0 %v3672_v15  ;;  %2033 = vmatprep.subr.mxu1 %v3672_v15 }
 0x72a   :  { %2001 = vmatpush3.msra.mxu0 %v1710_v49  ;;  %2034 = vmatpush3.msra.mxu1 %v1804_v13 }
 0x72b   :  { %2002 = vmatprep.subr.mxu0 %v3672_v15  ;;  %2035 = vmatprep.subr.mxu1 %v3672_v15 }
 0x72c   :  { %2003 = vmatpush3.msra.mxu0 %v1709_v55  ;;  %2036 = vmatpush3.msra.mxu1 %v1803_v14 }
 0x72d   :  { %2004 = vmatprep.subr.mxu0 %v3672_v15  ;;  %2037 = vmatprep.subr.mxu1 %v3672_v15 }
 0x72e   :  { %2005 = vmatpush3.msra.mxu0 %v1708_v5  ;;  %2038 = vmatpush3.msra.mxu1 %v1802_v16 }
 0x72f   :  { %2006 = vmatprep.subr.mxu0 %v3672_v15  ;;  %2039 = vmatprep.subr.mxu1 %v3672_v15 }
 0x730   :  { %2007 = vmatpush3.msra.mxu0 %v1707_v59  ;;  %2040 = vmatpush3.msra.mxu1 %v1801_v18 }
 0x731   :  { %2008 = vmatprep.subr.mxu0 %v3672_v15  ;;  %2041 = vmatprep.subr.mxu1 %v3672_v15 }
 0x732   :  { %2009 = vmatpush3.msra.mxu0 %v1706_v63  ;;  %2042 = vmatpush3.msra.mxu1 %v1800_v61 }
 0x733   :  { %2043 = vmatprep.subr.mxu1 %v3672_v15 }
 0x734   :  { %2044 = vmatpush3.msra.mxu1 %v1799_v45 }
 0x7d3   :  { %v1606_v20 = vpop.f32.mrf.mxu0  ;;  %v1677_v27 = vpop.f32.mrf.mxu1 }
 0x7d4   :  { %v1607_v21 = vadd.f32 %v1606_v20, %v1532_v19  ;;  %v1678_v17 = vadd.f32 %v1677_v27, %v1534_v34 }
 0x7d5   :  { %v1608_v23 = vpop.f32.mrf.mxu0  ;;  %v1679_v31 = vpop.f32.mrf.mxu1 }
 0x7d6   :  { %v1939_v24 = vmul.f32 -1.442695, %v1607_v21  ;;  %v1609_v25 = vadd.f32 %v1608_v23, %v1533_v22  ;;  %v1680_v33 = vadd.f32 %v1679_v31, %v1535_v32 }
 0x7d8   :  { %2167 = vpow2.f32 %v1939_v24  ;;  %v1940_v30 = vmul.f32 -1.442695, %v1609_v25  ;;  %v1941_v35 = vmul.f32 -1.442695, %v1680_v33 }
 0x7da   :  { %2169 = vpow2.f32 %v1940_v30 }
 0x7db   :  { %2171 = vpow2.f32 %v1941_v35 }
 0x7e5   :  { %v2168_v36 = vpop.eup %2167 }
 0x7e6   :  { %v1685_v37 = vadd.f32 1.0, %v2168_v36 }
 0x7e7   :  { %v2170_v38 = vpop.eup %2169 }
 0x7e8   :  { %2173 = vrcp.f32 %v1685_v37  ;;  %v1691_v60 = vadd.f32 1.0, %v2170_v38  ;;  %v2172_v39 = vpop.eup %2171 }
 0x7e9   :  { %2175 = vtanh.f32 %v1678_v17  ;;  %v1698_v43 = vadd.f32 1.0, %v2172_v39 }
 0x7ea   :  { %2177 = vrcp.f32 %v1691_v60 }
 0x7eb   :  { %2179 = vrcp.f32 %v1698_v43 }
 0x7f5   :  { %v2174_v40 = vpop.eup %2173 }
 0x7f6   :  { %v2176_v41 = vpop.eup %2175 }
 0x7f7   :  { %v2178_v42 = vpop.eup %2177  ;;  %v1702_v48 = vmul.f32 %v2176_v41, %v2174_v40 }
 0x7f8   :  { %v1701_v62 = vmul.f32 %v2178_v42, %v3253_v1  ;;  %v2180_v46 = vpop.eup %2179  ;;  %v1942_v1 = vld [vmem:[%s3403_s5] ss:$0 sm:$0xff] }
 0x7fa   :  { %v1703_v6 = vadd.f32 %v1702_v48, %v1701_v62 }
 0x7fc   :  { %2181 = vtanh.f32 %v1703_v6 }
 0x809   :  { %v2182_v56 = vpop.eup %2181 }
 0x80a   :  { %v1705_v54 = vmul.f32 %v2182_v56, %v2180_v46 }
 0x80c   :  { %2011 = vmatmul.mubr.f32.vlgmr.msra.gmra.mxu0 %v1705_v54 }
 0x8cc   :  { %v1795_v57 = vpop.f32.mrf.mxu0 }
 0x8cd   :  { %v1796_v7 = vadd.f32 %v1942_v1, %v1795_v57 }
 0x8ce   :  { %v2012_v29 = vpop.f32.mrf.mxu0 }
 0x8cf   :  { %2046 = vmatmul.mubr.f32.vlgmr.msra.gmra.mxu1 %v1796_v7 }
 0x98f   :  { %v1888_v15 = vpop.f32.mrf.mxu1 }
 0x990   :  { %v1889_v58 = vadd.f32 %v1943_v26, %v1888_v15 }
 0x991   :  { %v2047_v2 = vpop.f32.mrf.mxu1 }
 0x992   :  { %1893 = vst.msk [vmem:[#allocation7] sm:$0x3] %vm1892_vm3, %v1889_v58 }
 0x993   :  { %2298 = shalt.err (!%p2295_p0)
}
 0x994   :  { %1903 = dma.vmem_to_hbm [thread:$0]  %s1901_s17, 32, %s3406_s8, [#allocation4]  }
 0x995   :  { %2311 = dma.done.wait [#allocation4], 32  }
 0x996   :  { %2312 = vsyncadd [#allocation4], 4294967264 }
 0x997   :  { %1907 = vsyncpa [#allocation3], 1 }
 0x998   :  { %1908 = vsyncpa [#allocation6], 1 }
 0x999   :  { %1909 = vsyncpa [#allocation4], 1 }

</bundles_post_ra>
